<compile_context>
chip_gen: v7x
topology: tpu7x:2x2x1
jax: 0.10.0
libtpu: 0.0.40
codegen_flags: <defaults>
</compile_context>

<pallas_src>
import math
import jax
import jax.numpy as jnp
from jax.experimental import pallas as pl
from jax.experimental.pallas import tpu as pltpu


def _composer_kernel(hh_ref, lc_ref, rc_ref, w_ref, b_ref, c_ref, h_ref):
    # Single fused matmul for all four gates of this row tile: (TM, 4*Dp).
    pre = (jnp.dot(hh_ref[...], w_ref[...], preferred_element_type=jnp.float32)
           + b_ref[...])

    dp = c_ref.shape[-1]                      # lane-aligned gate width

    def sig(x):                               # sigmoid via a single tanh (EUP)
        return 0.5 * (jnp.tanh(0.5 * x) + 1.0)

    i_gate  = sig(pre[:, 0 * dp:1 * dp])      # input gate
    lf_gate = sig(pre[:, 1 * dp:2 * dp])      # left forget gate
    rf_gate = sig(pre[:, 2 * dp:3 * dp])      # right forget gate
    update  = jnp.tanh(pre[:, 3 * dp:4 * dp])  # cell update

    c = i_gate * update + lf_gate * lc_ref[...] + rf_gate * rc_ref[...]
    c_ref[...] = c.astype(c_ref.dtype)
    h_ref[...] = jnp.tanh(c).astype(h_ref.dtype)


def binary_tree_composer(lc, lh, rc, rh, wl, wr, b, *, tile_m=256, use_bf16=True):
    """lc, lh, rc, rh : (N, D) float32 (N = batched tree nodes).
    wl, wr : (D, 4D) fused gate weights (gate order i|lf|rf|u).  b : (1, 4D)."""
    N, D = lc.shape
    Dp = -(-D // 128) * 128                   # pad each gate block to 128 lanes
    K = 2 * D

    # --- fuse the two matmuls ------------------------------------------------
    hh = jnp.concatenate([lh, rh], axis=1)                      # (N, 2D)
    w = jnp.concatenate([wl, wr], axis=0)                       # (2D, 4D)

    # --- lane-align each gate block to Dp ------------------------------------
    w = jnp.pad(w.reshape(K, 4, D), ((0, 0), (0, 0), (0, Dp - D))).reshape(K, 4 * Dp)
    bp = jnp.pad(b.reshape(1, 4, D), ((0, 0), (0, 0), (0, Dp - D))).reshape(1, 4 * Dp)
    lcp = jnp.pad(lc, ((0, 0), (0, Dp - D)))
    rcp = jnp.pad(rc, ((0, 0), (0, Dp - D)))

    # --- row tiling over the node batch --------------------------------------
    tile_m = min(tile_m, -(-N // 8) * 8)
    Np = -(-N // tile_m) * tile_m
    if Np != N:
        rpad = ((0, Np - N), (0, 0))
        hh, lcp, rcp = jnp.pad(hh, rpad), jnp.pad(lcp, rpad), jnp.pad(rcp, rpad)

    # --- bf16 matmul operands (f32 accumulation inside the kernel) -----------
    mm_dtype = jnp.bfloat16 if use_bf16 else lc.dtype
    hh = hh.astype(mm_dtype)
    w = w.astype(mm_dtype)

    row = lambda shape: pl.BlockSpec(shape, lambda i: (i, 0))   # tiled over grid
    rep = lambda shape: pl.BlockSpec(shape, lambda i: (0, 0))   # VMEM-resident

    c_pad, h_pad = pl.pallas_call(
        _composer_kernel,
        out_shape=(jax.ShapeDtypeStruct((Np, Dp), lc.dtype),
                   jax.ShapeDtypeStruct((Np, Dp), lc.dtype)),
        grid=(Np // tile_m,),
        in_specs=[row((tile_m, K)),      # hh
                  row((tile_m, Dp)),     # lc
                  row((tile_m, Dp)),     # rc
                  rep((K, 4 * Dp)),      # fused weights (resident)
                  rep((1, 4 * Dp))],     # fused bias    (resident)
        out_specs=(row((tile_m, Dp)), row((tile_m, Dp))),
        compiler_params=pltpu.CompilerParams(dimension_semantics=("parallel",)),
    )(hh, lcp, rcp, w, bp)

    return c_pad[:N, :D], h_pad[:N, :D]


def init_params(key, mem_dim):
    """Deterministic init of the 8 nn.Linear(mem_dim, mem_dim) layers, fused.

    PyTorch Linear computes y = x @ W.T + b; we directly sample W_T of shape
    (in, out) (equivalent parameterization) and concatenate the 4 gates along
    columns.  Gate order: i, lf, rf, u.  Fused bias = b_lh + b_rh per gate.
    """
    bound = 1.0 / math.sqrt(mem_dim)
    keys = jax.random.split(key, 16)
    k = iter(keys)

    def lin():
        w = jax.random.uniform(next(k), (mem_dim, mem_dim), jnp.float32, -bound, bound)
        bb = jax.random.uniform(next(k), (mem_dim,), jnp.float32, -bound, bound)
        return w, bb

    (ilh_w, ilh_b), (irh_w, irh_b) = lin(), lin()
    (lflh_w, lflh_b), (lfrh_w, lfrh_b) = lin(), lin()
    (rflh_w, rflh_b), (rfrh_w, rfrh_b) = lin(), lin()
    (ulh_w, ulh_b), (urh_w, urh_b) = lin(), lin()

    wl = jnp.concatenate([ilh_w, lflh_w, rflh_w, ulh_w], axis=1)   # (D, 4D)
    wr = jnp.concatenate([irh_w, lfrh_w, rfrh_w, urh_w], axis=1)   # (D, 4D)
    b = jnp.concatenate([ilh_b + irh_b, lflh_b + lfrh_b,
                         rflh_b + rfrh_b, ulh_b + urh_b], axis=0)[None, :]  # (1, 4D)
    return wl, wr, b


def reference(lc, lh, rc, rh, wl, wr, b):
    """Pure-JAX reference matching the PyTorch forward."""
    pre = lh @ wl + rh @ wr + b
    D = lc.shape[-1]
    i = jax.nn.sigmoid(pre[:, 0 * D:1 * D])
    lf = jax.nn.sigmoid(pre[:, 1 * D:2 * D])
    rf = jax.nn.sigmoid(pre[:, 2 * D:3 * D])
    u = jnp.tanh(pre[:, 3 * D:4 * D])
    c = i * u + lf * lc + rf * rc
    return c, jnp.tanh(c)


if __name__ == "__main__":
    n_nodes, mem_dim = 512, 32          # many tree nodes batched into one call

    key = jax.random.PRNGKey(0)
    kp, k1, k2, k3, k4 = jax.random.split(key, 5)

    wl, wr, b = init_params(kp, mem_dim)
    lc = jax.random.normal(k1, (n_nodes, mem_dim), jnp.float32)
    lh = jax.random.normal(k2, (n_nodes, mem_dim), jnp.float32)
    rc = jax.random.normal(k3, (n_nodes, mem_dim), jnp.float32)
    rh = jax.random.normal(k4, (n_nodes, mem_dim), jnp.float32)

    c, h = binary_tree_composer(lc, lh, rc, rh, wl, wr, b)
    jax.block_until_ready((c, h))

    # Tight check: same math with the same bf16-cast matmul operands.
    bf = lambda x: x.astype(jnp.bfloat16).astype(jnp.float32)
    c_bf, h_bf = reference(lc, bf(lh), rc, bf(rh), bf(wl), bf(wr), b)
    assert jnp.allclose(c, c_bf, atol=1e-3, rtol=1e-3)
    assert jnp.allclose(h, h_bf, atol=1e-3, rtol=1e-3)

    # Semantic check against the pure-f32 PyTorch-equivalent forward.
    c_ref, h_ref = reference(lc, lh, rc, rh, wl, wr, b)
    assert jnp.allclose(c, c_ref, atol=3e-2, rtol=3e-2)
    assert jnp.allclose(h, h_ref, atol=3e-2, rtol=3e-2)

    print("KERNEL_OK")
</pallas_src>

<mosaic_0001>
module attributes {stable_mosaic.version = 11 : i64} {
  func.func @_composer_kernel(%arg0: i32, %arg1: memref<256x64xbf16, #tpu.memory_space<vmem>>, %arg2: memref<256x128xf32, #tpu.memory_space<vmem>>, %arg3: memref<256x128xf32, #tpu.memory_space<vmem>>, %arg4: memref<64x512xbf16, #tpu.memory_space<vmem>>, %arg5: memref<1x512xf32, #tpu.memory_space<vmem>>, %arg6: memref<256x128xf32, #tpu.memory_space<vmem>>, %arg7: memref<256x128xf32, #tpu.memory_space<vmem>>) attributes {dimension_semantics = [#tpu.dimension_semantics<parallel>], iteration_bounds = array<i64: 2>, scalar_prefetch = 0 : i64, scratch_operands = 0 : i64, tpu.core_type = #tpu.core_type<tc>, window_params = [{transform_indices = @transform_0, window_bounds = array<i64: 256, 64>}, {transform_indices = @transform_1, window_bounds = array<i64: 256, 128>}, {transform_indices = @transform_2, window_bounds = array<i64: 256, 128>}, {pipeline_mode = #tpu.pipeline_mode<synchronous>, transform_indices = @transform_3, window_bounds = array<i64: 64, 512>}, {pipeline_mode = #tpu.pipeline_mode<synchronous>, transform_indices = @transform_4, window_bounds = array<i64: 1, 512>}, {transform_indices = @transform_5, window_bounds = array<i64: 256, 128>}, {transform_indices = @transform_6, window_bounds = array<i64: 256, 128>}]} {
    %c0 = arith.constant 0 : index
    %c0_0 = arith.constant 0 : index
    %0 = vector.load %arg1[%c0, %c0_0] : memref<256x64xbf16, #tpu.memory_space<vmem>>, vector<256x64xbf16>
    %c0_1 = arith.constant 0 : index
    %c0_2 = arith.constant 0 : index
    %1 = vector.load %arg4[%c0_1, %c0_2] : memref<64x512xbf16, #tpu.memory_space<vmem>>, vector<64x512xbf16>
    %cst = arith.constant dense<0.000000e+00> : vector<256x512xf32>
    %2 = tpu.matmul %0, %1, %cst {dimension_numbers = #tpu.dot_dimension_numbers<[1], [0], [0], [1], [0, 0, 1, 1], [], []>} : vector<256x64xbf16>, vector<64x512xbf16>, vector<256x512xf32> -> vector<256x512xf32>
    %c0_3 = arith.constant 0 : index
    %c0_4 = arith.constant 0 : index
    %3 = vector.load %arg5[%c0_3, %c0_4] : memref<1x512xf32, #tpu.memory_space<vmem>>, vector<1x512xf32>
    %4 = vector.broadcast %3 : vector<1x512xf32> to vector<256x512xf32>
    %5 = arith.addf %2, %4 : vector<256x512xf32>
    %6 = vector.extract_strided_slice %5 {offsets = [0, 0], sizes = [256, 128], strides = [1, 1]} : vector<256x512xf32> to vector<256x128xf32>
    %cst_5 = arith.constant 5.000000e-01 : f32
    %7 = vector.broadcast %cst_5 : f32 to vector<256x128xf32>
    %8 = arith.mulf %7, %6 : vector<256x128xf32>
    %9 = math.tanh %8 : vector<256x128xf32>
    %cst_6 = arith.constant 1.000000e+00 : f32
    %10 = vector.broadcast %cst_6 : f32 to vector<256x128xf32>
    %11 = arith.addf %9, %10 : vector<256x128xf32>
    %cst_7 = arith.constant 5.000000e-01 : f32
    %12 = vector.broadcast %cst_7 : f32 to vector<256x128xf32>
    %13 = arith.mulf %12, %11 : vector<256x128xf32>
    %14 = vector.extract_strided_slice %5 {offsets = [0, 128], sizes = [256, 128], strides = [1, 1]} : vector<256x512xf32> to vector<256x128xf32>
    %cst_8 = arith.constant 5.000000e-01 : f32
    %15 = vector.broadcast %cst_8 : f32 to vector<256x128xf32>
    %16 = arith.mulf %15, %14 : vector<256x128xf32>
    %17 = math.tanh %16 : vector<256x128xf32>
    %cst_9 = arith.constant 1.000000e+00 : f32
    %18 = vector.broadcast %cst_9 : f32 to vector<256x128xf32>
    %19 = arith.addf %17, %18 : vector<256x128xf32>
    %cst_10 = arith.constant 5.000000e-01 : f32
    %20 = vector.broadcast %cst_10 : f32 to vector<256x128xf32>
    %21 = arith.mulf %20, %19 : vector<256x128xf32>
    %22 = vector.extract_strided_slice %5 {offsets = [0, 256], sizes = [256, 128], strides = [1, 1]} : vector<256x512xf32> to vector<256x128xf32>
    %cst_11 = arith.constant 5.000000e-01 : f32
    %23 = vector.broadcast %cst_11 : f32 to vector<256x128xf32>
    %24 = arith.mulf %23, %22 : vector<256x128xf32>
    %25 = math.tanh %24 : vector<256x128xf32>
    %cst_12 = arith.constant 1.000000e+00 : f32
    %26 = vector.broadcast %cst_12 : f32 to vector<256x128xf32>
    %27 = arith.addf %25, %26 : vector<256x128xf32>
    %cst_13 = arith.constant 5.000000e-01 : f32
    %28 = vector.broadcast %cst_13 : f32 to vector<256x128xf32>
    %29 = arith.mulf %28, %27 : vector<256x128xf32>
    %30 = vector.extract_strided_slice %5 {offsets = [0, 384], sizes = [256, 128], strides = [1, 1]} : vector<256x512xf32> to vector<256x128xf32>
    %31 = math.tanh %30 : vector<256x128xf32>
    %32 = arith.mulf %13, %31 : vector<256x128xf32>
    %c0_14 = arith.constant 0 : index
    %c0_15 = arith.constant 0 : index
    %33 = vector.load %arg2[%c0_14, %c0_15] : memref<256x128xf32, #tpu.memory_space<vmem>>, vector<256x128xf32>
    %34 = arith.mulf %21, %33 : vector<256x128xf32>
    %35 = arith.addf %32, %34 : vector<256x128xf32>
    %c0_16 = arith.constant 0 : index
    %c0_17 = arith.constant 0 : index
    %36 = vector.load %arg3[%c0_16, %c0_17] : memref<256x128xf32, #tpu.memory_space<vmem>>, vector<256x128xf32>
    %37 = arith.mulf %29, %36 : vector<256x128xf32>
    %38 = arith.addf %35, %37 : vector<256x128xf32>
    %c0_18 = arith.constant 0 : index
    %c0_19 = arith.constant 0 : index
    %39 = vector.load %arg6[%c0_18, %c0_19] : memref<256x128xf32, #tpu.memory_space<vmem>>, vector<256x128xf32>
    tpu.vector_store %arg6[%c0_18, %c0_19], %38 {strides = array<i32>} : memref<256x128xf32, #tpu.memory_space<vmem>>, vector<256x128xf32>,
    %40 = math.tanh %38 : vector<256x128xf32>
    %c0_20 = arith.constant 0 : index
    %c0_21 = arith.constant 0 : index
    %41 = vector.load %arg7[%c0_20, %c0_21] : memref<256x128xf32, #tpu.memory_space<vmem>>, vector<256x128xf32>
    tpu.vector_store %arg7[%c0_20, %c0_21], %40 {strides = array<i32>} : memref<256x128xf32, #tpu.memory_space<vmem>>, vector<256x128xf32>,
    return
  }
  func.func @transform_0(%arg0: i32) -> (i32, i32) {
    %c0_i32 = arith.constant 0 : i32
    %c0_i32_0 = arith.constant 0 : i32
    return %arg0, %c0_i32 : i32, i32
  }
  func.func @transform_1(%arg0: i32) -> (i32, i32) {
    %c0_i32 = arith.constant 0 : i32
    %c0_i32_0 = arith.constant 0 : i32
    return %arg0, %c0_i32 : i32, i32
  }
  func.func @transform_2(%arg0: i32) -> (i32, i32) {
    %c0_i32 = arith.constant 0 : i32
    %c0_i32_0 = arith.constant 0 : i32
    return %arg0, %c0_i32 : i32, i32
  }
  func.func @transform_3(%arg0: i32) -> (i32, i32) {
    %c0_i32 = arith.constant 0 : i32
    %c0_i32_0 = arith.constant 0 : i32
    %c0_i32_1 = arith.constant 0 : i32
    return %c0_i32, %c0_i32_0 : i32, i32
  }
  func.func @transform_4(%arg0: i32) -> (i32, i32) {
    %c0_i32 = arith.constant 0 : i32
    %c0_i32_0 = arith.constant 0 : i32
    %c0_i32_1 = arith.constant 0 : i32
    return %c0_i32, %c0_i32_0 : i32, i32
  }
  func.func @transform_5(%arg0: i32) -> (i32, i32) {
    %c0_i32 = arith.constant 0 : i32
    %c0_i32_0 = arith.constant 0 : i32
    return %arg0, %c0_i32 : i32, i32
  }
  func.func @transform_6(%arg0: i32) -> (i32, i32) {
    %c0_i32 = arith.constant 0 : i32
    %c0_i32_0 = arith.constant 0 : i32
    return %arg0, %c0_i32 : i32, i32
  }
}

</mosaic_0001>

<bundles_post_ra>
// kernel: tpu_custom_call.1
= control target key start
LH: loop header
LB: loop body
LE: loop exit
PB: predicated region body
PF: predicated region fallthrough
CT: control target
= control target key end

     0   :  { %s3638_s0 = inlined_call_operand.vmem [shape: bf16[512,64], index: 0, kind: input, shape index: {}]   ;;  %s3639_s1 = inlined_call_operand.hbm [shape: f32[512,128], index: 1, kind: input, shape index: {}]   ;;  %s3640_s2 = inlined_call_operand.hbm [shape: f32[512,128], index: 2, kind: input, shape index: {}]   ;;  %s3641_s3 = inlined_call_operand.vmem [shape: bf16[64,512], index: 3, kind: input, shape index: {}]   ;;  %s3642_s4 = inlined_call_operand.vmem [shape: f32[1,512], index: 4, kind: input, shape index: {}]   ;;  %s3643_s5 = inlined_call_operand.hbm [shape: f32[512,128], index: 5, kind: output, shape index: {0}]   ;;  %s3644_s6 = inlined_call_operand.hbm [shape: f32[512,128], index: 6, kind: output, shape index: {1}]  }
   0x1   :  { %3648 = sst [smem:[#allocation15_spill]] %s3639_s1 }
   0x2   :  { %12 = vsyncpa [#allocation3], 0 }
   0x3   :  { %14 = vsyncpa [#allocation3 + $0x1], 0 }
   0x4   :  { %15 = vsyncpa [#allocation6], 0 }
   0x5   :  { %17 = vsyncpa [#allocation6 + $0x1], 0 }
   0x6   :  { %18 = vsyncpa [#allocation4], 0 }
   0x7   :  { %20 = vsyncpa [#allocation4 + $0x1], 0 }
   0x8   :  { %21 = vsyncpa [#allocation9], 0 }
   0x9   :  { %23 = vsyncpa [#allocation9 + $0x1], 0  ;;  %s2645_s21 = smov 0   ;;  %s2647_s22 = smov 0  }
   0xa   :  { %s2649_s23 = smov 0   ;;  %s2651_s24 = smov 0  }
   0xb LB: > { %s2666_s25 = sadd.s32 4294967295, %s2599_s24   ;;  %s1924_s26 = sadd.s32 4294967294, %s2599_s24   ;;  %s2599_s24 = sphi %s2651_s24, %s3666_s24   ;;  %s2595_s23 = sphi %s2649_s23, %s3665_s23   ;;  %s2591_s22 = sphi %s2647_s22, %s3664_s22   ;;  %s2587_s21 = sphi %s2645_s21, %s3663_s21  }
   0xc   : > { %s2670_s27 = sadd.s32 1, %s2599_s24   ;;  %s62_s28 = sadd.s32 1, %s2595_s23 }
   0xd   : > { %s59_s29 = ssub.s32 %s2599_s24, %s2670_s27  ;;  %p69_p0 = scmp.ne.s32.totalorder %s2595_s23, %s2591_s22 }
   0xe   : > { %p60_p1 = scmp.eq.s32.totalorder %s59_s29, 0  ;;  %p70_p2 = scmp.eq.s32.totalorder %s2599_s24, 0 }
   0xf   : > { %p75_p3 = scmp.ne.s32.totalorder %s2591_s22, %s2587_s21  ;;  %p76_p4 = scmp.eq.s32.totalorder %s2666_s25, 0 }
  0x10   : > { %s2682_s30 = scalar_select %p60_p1, %s2595_s23, %s62_s28  }
  0x11   : > { %p2684_p5 = por %p70_p2, %p69_p0  ;;  %p2688_p6 = por %p76_p4, %p75_p3 }
  0x12   : > { %p167_p7 = scmp.eq.s32.totalorder %s2666_s25, 1  ;;  %p173_p8 = scmp.eq.s32.totalorder %s1924_s26, 1 }
  0x13   : > { %s3650_s8 = scalar_select %p2688_p6, 1, 0 }
  0x14   : > { %p2038_p10 = scmp.lt.s32.totalorder %s2599_s24, 2  ;;  %p2695_p11 = por %p167_p7, %p69_p0 }
  0x15   : > { %p2699_p12 = por %p173_p8, %p75_p3  ;;  %s2704_s11 = sand.u32 1, %s2595_s23  }
  0x16   : > { %s3651_s9 = scalar_select %p2695_p11, 1, 0 }
  0x17   : > { %s3652_s10 = scalar_select %p2699_p12, 1, 0 }
  0x18   : > { %s2012_s12 = sshll.u32 %s2599_s24, 12  ;;  %s1927_s13 = sshll.u32 %s2704_s11, 8 }
  0x19   : > { %s3653_s1 = sld [smem:[#allocation15_spill]]  ;;  %s238_s17 = scalar_lea.vmem [#allocation2], %s1927_s13 }
  0x1a   : > { %s245_s18 = sshll.u32 %s238_s17, 4  ;;  %p2719_p13 = pnand %p2038_p10, %p2684_p5  ;;  %s2723_s18 = int_to_ptr.vmem [resolvable:$true] %s245_s18 }
  0x1b   : > { %s235_s20 = scalar_lea.sflag [#allocation3], %s2704_s11 }
  0x1c   : > { %p2439_p1 = pneg %p2719_p13 }
  0x1f   : > { %s2713_s16 = scalar_lea.hbm %s3653_s1, %s2012_s12  ;;  %s2442_s7 = scalar_lea.hbm %s3653_s1, 8192 }
  0x20   : > { %s2437_s26 = scalar_lea.hbm %s2713_s16, 4096  ;;  %p2443_p4 = scmp.lt.u32.totalorder %s2713_s16, %s3653_s1 }
  0x21   : > { %p2438_p0 = scmp.ne.s32.totalorder %s2713_s16, %s2437_s26  ;;  %p2444_p5 = scmp.lt.u32.totalorder %s2442_s7, %s2437_s26 }
  0x22   : > { %p2446_p8 = scmp.lt.u32.totalorder %s2437_s26, %s2713_s16 }
  0x23   : > { %p2440_p2 = pnand %p2439_p1, %p2438_p0  ;;  %p2445_p7 = por %p2444_p5, %p2443_p4 }
  0x25   : > { %p2441_p3 = pneg %p2440_p2  ;;  %p2447_p10 = por %p2446_p8, %p2445_p7 }
  0x27   : > { %p2448_p9 = pnand %p2447_p10, %p2441_p3 }
  0x29   : > { %2451 = shalt.err (!%p2448_p9)
}
  0x2a   : > { %s2452_s17 = scalar_lea.vmem %s2723_s18, 4096  ;;  %s2601_s28 = smov [#allocation2]  }
  0x2b   : > { %p2453_p0 = scmp.ne.s32.totalorder %s2723_s18, %s2452_s17  ;;  %s2457_s29 = sshll.u32 %s2601_s28, 4  ;;  %s2458_s29 = int_to_ptr.vmem [resolvable:$false] %s2457_s29 }
  0x2c   : > { %s2459_s14 = scalar_lea.vmem %s2458_s29, 8192  ;;  %p2460_p11 = scmp.lt.s32.totalorder %s2723_s18, %s2458_s29 }
  0x2d   : > { %p2455_p2 = pnand %p2453_p0, %p2439_p1  ;;  %p2461_p4 = scmp.lt.s32.totalorder %s2459_s14, %s2452_s17 }
  0x2f   : > { %p2456_p12 = pneg %p2455_p2  ;;  %p2462_p5 = por %p2461_p4, %p2460_p11 }
  0x31   : > { %p2463_p7 = pnand %p2462_p5, %p2456_p12 }
  0x33   : > { %2466 = shalt.err (!%p2463_p7)
}
  0x34   : > { %s3646_s26 = smov 128   ;;  %s2603_s7 = smov 8  }
  0x35   : > { %2027 = dma.hbm_to_vmem [thread:$0]  (!%p2719_p13), %s2713_s16, 4096, %s2723_s18, %s235_s20, %s3646_s26, %s3646_s26, %s2603_s7  }
  0x36   : > { %p1933_p9 = scmp.ge.s32.totalorder %s2599_s24, 1  ;;  %p274_p11 = scmp.lt.s32.totalorder %s2599_s24, 3 }
  0x37   : > { %s2767_s29 = scalar_lea.hbm %s3640_s2, %s2012_s12  ;;  %s259_s14 = scalar_lea.vmem [#allocation5], %s1927_s13 }
  0x38   : > { %p2758_p12 = pnand %p1933_p9, %p274_p11  ;;  %s266_s1 = sshll.u32 %s259_s14, 4  ;;  %s2771_s1 = int_to_ptr.vmem [resolvable:$true] %s266_s1 }
  0x39   : > { %s256_s16 = scalar_lea.sflag [#allocation6], %s2704_s11  ;;  %s2467_s18 = scalar_lea.hbm %s2767_s29, 4096 }
  0x3a   : > { %p2468_p3 = scmp.ne.s32.totalorder %s2767_s29, %s2467_s18  ;;  %s2472_s12 = scalar_lea.hbm %s3640_s2, 8192 }
  0x3b   : > { %p2473_p0 = scmp.lt.u32.totalorder %s2767_s29, %s3640_s2  ;;  %p2474_p2 = scmp.lt.u32.totalorder %s2472_s12, %s2467_s18 }
  0x3c   : > { %p2470_p8 = pnand %p2468_p3, %p2439_p1  ;;  %p2476_p5 = scmp.lt.u32.totalorder %s2467_s18, %s2767_s29 }
  0x3d   : > { %p2475_p4 = por %p2474_p2, %p2473_p0 }
  0x3e   : > { %p2471_p10 = pneg %p2470_p8 }
  0x3f   : > { %p2477_p7 = por %p2476_p5, %p2475_p4 }
  0x41   : > { %p2478_p9 = pnand %p2477_p7, %p2471_p10 }
  0x43   : > { %2481 = shalt.err (!%p2478_p9)
}
  0x44   : > { %s2482_s13 = scalar_lea.vmem %s2771_s1, 4096  ;;  %s2604_s14 = smov [#allocation5]  }
  0x45   : > { %p2483_p11 = scmp.ne.s32.totalorder %s2771_s1, %s2482_s13  ;;  %s2487_s20 = sshll.u32 %s2604_s14, 4  ;;  %s2488_s20 = int_to_ptr.vmem [resolvable:$false] %s2487_s20 }
  0x46   : > { %s2489_s26 = scalar_lea.vmem %s2488_s20, 8192  ;;  %p2490_p6 = scmp.lt.s32.totalorder %s2771_s1, %s2488_s20 }
  0x47   : > { %p2485_p3 = pnand %p2483_p11, %p2439_p1  ;;  %p2491_p0 = scmp.lt.s32.totalorder %s2489_s26, %s2482_s13 }
  0x49   : > { %p2486_p8 = pneg %p2485_p3  ;;  %p2492_p2 = por %p2491_p0, %p2490_p6 }
  0x4b   : > { %p2493_p4 = pnand %p2492_p2, %p2486_p8 }
  0x4d   : > { %2496 = shalt.err (!%p2493_p4)
}
  0x4e   : > { %s3656_s18 = smov 128   ;;  %278 = sbr.rel (%p2758_p12) target bundleno = 565 (0x235), region = 40 }
  0x4f   : > { %2030 = dma.hbm_to_vmem [thread:$0]  (!%p2719_p13), %s2767_s29, 4096, %s2771_s1, %s256_s16, %s3656_s18, %s3656_s18, %s2603_s7  }
  0x55   : > { %s2805_s17 = sand.u32 1, %s2591_s22   ;;  %p3657_p6 = scmp.ne.s32.totalorder %s3650_s8, 0 }
  0x56   : > { %s2808_s12 = sshll.u32 %s2805_s17, 8  ;;  %s281_s19 = scalar_lea.sflag [#allocation3], %s2805_s17 }
  0x57   : > { %s2812_s28 = scalar_lea.vmem [#allocation2], %s2808_s12 }
  0x58   : > { %2570 = dma.done.wait (%p3657_p6), %s281_s19, 4096  }
  0x59   : > { %2572 = vsyncadd (%p3657_p6), %s281_s19, 4294963200  ;;  %s290_s1 = scalar_lea.sflag [#allocation6], %s2805_s17  ;;  %s2820_s11 = scalar_lea.vmem [#allocation5], %s2808_s12 }
  0x5a   : > { %2574 = dma.done.wait (%p3657_p6), %s290_s1, 4096  }
  0x5b   : > { %2576 = vsyncadd (%p3657_p6), %s290_s1, 4294963200  ;;  %v2605_v0 = vmov 0   ;;  %s1938_s7 = sshll.u32 %s2666_s25, 5  ;;  %v2077_v1 = vld [vmem:[%s3641_s3 + $0x4] ss:$16 sps:$4 sm:$0xff]   ;;  %vm578_vm0 = vcmask 523264   ;;  %v398_v33 = vlaneseq }
  0x5c   : > { %659 = vmatprep.mubr.bf16.mxu0 %v2605_v0  ;;  %852 = vmatprep.mubr.bf16.mxu1 %v2605_v0  ;;  %p338_p13 = scmp.lt.s32.totalorder %s1938_s7, 63  ;;  %v2079_v2 = vld [vmem:[%s3641_s3 + $0xc] ss:$16 sps:$4 sm:$0xff]   ;;  %v2081_v3 = vld [vmem:[%s3641_s3] ss:$16 sps:$4 sm:$0xff]   ;;  %s3020_s14 = scalar_lea.vmem [#allocation7], %s2808_s12 }
  0x5d   : > { %627 = vmatprep.subr.bf16.mxu0 %v2077_v1  ;;  %v2082_v4 = vld [vmem:[%s3641_s3 + $0x8] ss:$16 sps:$4 sm:$0xff]   ;;  %820 = vmatprep.subr.bf16.mxu1 %v2079_v2  ;;  %v2083_v5 = vld [vmem:[%s3641_s3 + $0x24] ss:$16 sps:$4 sm:$0xff]   ;;  %v2085_v6 = vld [vmem:[%s3641_s3 + $0x2c] ss:$16 sps:$4 sm:$0xff]  }
  0x5e   : > { %s3668_s7 = smov (!%p338_p13, %s1938_s7), 63  ;;  %628 = vmatpush1.bf16.msra.mxu0 %v2081_v3  ;;  %821 = vmatpush1.bf16.msra.mxu1 %v2082_v4  ;;  %v2087_v7 = vld [vmem:[%s3641_s3 + $0x20] ss:$16 sps:$4 sm:$0xff]   ;;  %v2088_v8 = vld [vmem:[%s3641_s3 + $0x28] ss:$16 sps:$4 sm:$0xff]   ;;  %v399_v34 = vshrl.u32 %v398_v33, 7 }
  0x5f   : > { %629 = vmatprep.subr.bf16.mxu0 %v2083_v5  ;;  %822 = vmatprep.subr.bf16.mxu1 %v2085_v6  ;;  %v2089_v9 = vld [vmem:[%s3641_s3 + $0x44] ss:$16 sps:$4 sm:$0xff]   ;;  %s1939_s26 = sshll.u32 %s3668_s7, 2  ;;  %v2091_v10 = vld [vmem:[%s3641_s3 + $0x4c] ss:$16 sps:$4 sm:$0xff]   ;;  %s3060_s7 = scalar_lea.vmem [#allocation8], %s2808_s12 }
  0x60   : > { %v2093_v11 = vld [vmem:[%s3641_s3 + $0x40] ss:$16 sps:$4 sm:$0xff]   ;;  %v2094_v12 = vld [vmem:[%s3641_s3 + $0x48] ss:$16 sps:$4 sm:$0xff]   ;;  %v2095_v13 = vld [vmem:[%s3641_s3 + $0x64] ss:$16 sps:$4 sm:$0xff]   ;;  %s2874_s19 = scalar_lea.vmem %s3638_s0, %s1939_s26 }
  0x61   : > { %v2097_v14 = vld [vmem:[%s3641_s3 + $0x6c] ss:$16 sps:$4 sm:$0xff]   ;;  %v2099_v15 = vld [vmem:[%s3641_s3 + $0x60] ss:$16 sps:$4 sm:$0xff]   ;;  %v2100_v16 = vld [vmem:[%s3641_s3 + $0x68] ss:$16 sps:$4 sm:$0xff]  }
  0x62   : > { %630 = vmatpush1.bf16.msra.mxu0 %v2087_v7  ;;  %823 = vmatpush1.bf16.msra.mxu1 %v2088_v8  ;;  %v2101_v17 = vld [vmem:[%s2874_s19] sm:$0xff]   ;;  %v2102_v18 = vld [vmem:[%s2874_s19 + $0x8] sm:$0xff]   ;;  %v2103_v19 = vld [vmem:[%s2874_s19 + $0x10] sm:$0xff]   ;;  %v400_v35 = vsub.s32 0, %v399_v34  ;;  %v408_v36 = vsub.s32 2, %v399_v34  ;;  %v404_v38 = vsub.s32 1, %v399_v34 }
  0x63   : > { %631 = vmatprep.subr.bf16.mxu0 %v2089_v9  ;;  %824 = vmatprep.subr.bf16.mxu1 %v2091_v10  ;;  %v2104_v20 = vld [vmem:[%s2874_s19 + $0x18] sm:$0xff]   ;;  %v2105_v21 = vld [vmem:[%s2874_s19 + $0x20] sm:$0xff]   ;;  %v2106_v22 = vld [vmem:[%s2874_s19 + $0x28] sm:$0xff]   ;;  %v412_v39 = vsub.s32 3, %v399_v34  ;;  %s2014_s12 = sshll.u32 %s2666_s25, 12  ;;  %s1768_s8 = sshll.u32 %s3020_s14, 4  ;;  %s3550_s8 = int_to_ptr.vmem [resolvable:$true] %s1768_s8 }
  0x64   : > { %v2107_v23 = vld [vmem:[%s2874_s19 + $0x30] sm:$0xff]   ;;  %v2108_v24 = vld [vmem:[%s2874_s19 + $0x38] sm:$0xff]   ;;  %v2109_v25 = vld [vmem:[%s2874_s19 + $0x40] sm:$0xff]   ;;  %s3548_s18 = scalar_lea.hbm %s3643_s5, %s2014_s12  ;;  %p3660_p12 = scmp.ne.s32.totalorder %s3651_s9, 0 }
  0x65   : > { %v2110_v26 = vld [vmem:[%s2874_s19 + $0x48] sm:$0xff]   ;;  %v2111_v27 = vld [vmem:[%s2874_s19 + $0x50] sm:$0xff]   ;;  %v2112_v28 = vld [vmem:[%s2874_s19 + $0x58] sm:$0xff]   ;;  %s2606_s1 = smov [#allocation7]  }
  0x66   : > { %632 = vmatpush1.bf16.msra.mxu0 %v2093_v11  ;;  %825 = vmatpush1.bf16.msra.mxu1 %v2094_v12  ;;  %v2113_v29 = vld [vmem:[%s2874_s19 + $0x60] sm:$0xff]   ;;  %v2114_v30 = vld [vmem:[%s2874_s19 + $0x68] sm:$0xff]   ;;  %v2115_v31 = vld [vmem:[%s2874_s19 + $0x70] sm:$0xff]   ;;  %s2501_s15 = sshll.u32 %s2606_s1, 4  ;;  %s2502_s15 = int_to_ptr.vmem [resolvable:$false] %s2501_s15 }
  0x67   : > { %633 = vmatprep.subr.bf16.mxu0 %v2095_v13  ;;  %826 = vmatprep.subr.bf16.mxu1 %v2097_v14  ;;  %v2116_v32 = vld [vmem:[%s2874_s19 + $0x78] sm:$0xff]   ;;  %v396_v37 = vld [vmem:[%s3642_s4] sm:$0xf]  ;;  %s2497_s19 = scalar_lea.vmem %s3550_s8, 4096  ;;  %s2503_s29 = scalar_lea.vmem %s2502_s15, 8192 }
  0x68   : > { %v2963_v40 = vrot.slane %v396_v37, %v400_v35  ;;  %v2965_v41 = vrot.slane %v396_v37, %v408_v36  ;;  %v2967_v42 = vrot.slane %v396_v37, %v404_v38  ;;  %v2969_v43 = vrot.slane %v396_v37, %v412_v39  ;;  %v1557_v38 = vld [vmem:[%s2820_s11] sm:$0xff]  ;;  %p2498_p1 = scmp.ne.s32.totalorder %s3550_s8, %s2497_s19  ;;  %p2504_p7 = scmp.lt.s32.totalorder %s3550_s8, %s2502_s15 }
  0x69   : > { %p2505_p9 = scmp.lt.s32.totalorder %s2503_s29, %s2497_s19 }
  0x6a   : > { %634 = vmatpush1.bf16.msra.mxu0 %v2099_v15  ;;  %827 = vmatpush1.bf16.msra.mxu1 %v2100_v16  ;;  %p2499_p10 = pnand %p2498_p1, %p3660_p12 }
  0x6b   : > { %p2506_p11 = por %p2505_p9, %p2504_p7 }
  0x6c   : > { %p2500_p5 = pneg %p2499_p10 }
  0x6d   : > { %1972 = vmatmul.mubr.msk.bf16.vlgmr.msra.gmra.mrb[0].mxu0 %vm578_vm0, %v2101_v17  ;;  %1988 = vmatmul.mubr.msk.bf16.vlgmr.msra.gmra.mrb[0].mxu1 %vm578_vm0, %v2101_v17 }
  0x6e   : > { %669 = vmatprep.mubr.bf16.mxu0 %v2605_v0  ;;  %862 = vmatprep.mubr.bf16.mxu1 %v2605_v0  ;;  %p2507_p3 = pnand %p2506_p11, %p2500_p5 }
  0x75   : > { %1973 = vmatmul.mubr.msk.bf16.gmra.mrb[4].mxu0 %vm578_vm0, %v2102_v18  ;;  %1989 = vmatmul.mubr.msk.bf16.gmra.mrb[4].mxu1 %vm578_vm0, %v2102_v18 }
  0x76   : > { %679 = vmatprep.mubr.bf16.mxu0 %v2605_v0  ;;  %872 = vmatprep.mubr.bf16.mxu1 %v2605_v0 }
  0x7d   : > { %1974 = vmatmul.mubr.msk.bf16.gmra.mrb[8].mxu0 %vm578_vm0, %v2103_v19  ;;  %1990 = vmatmul.mubr.msk.bf16.gmra.mrb[8].mxu1 %vm578_vm0, %v2103_v19 }
  0x7e   : > { %689 = vmatprep.mubr.bf16.mxu0 %v2605_v0  ;;  %882 = vmatprep.mubr.bf16.mxu1 %v2605_v0 }
  0x85   : > { %1975 = vmatmul.mubr.msk.bf16.gmra.mrb[12].mxu0 %vm578_vm0, %v2104_v20  ;;  %1991 = vmatmul.mubr.msk.bf16.gmra.mrb[12].mxu1 %vm578_vm0, %v2104_v20 }
  0x86   : > { %699 = vmatprep.mubr.bf16.mxu0 %v2605_v0  ;;  %892 = vmatprep.mubr.bf16.mxu1 %v2605_v0 }
  0x8d   : > { %1976 = vmatmul.mubr.msk.bf16.gmra.mrb[16].mxu0 %vm578_vm0, %v2105_v21  ;;  %1992 = vmatmul.mubr.msk.bf16.gmra.mrb[16].mxu1 %vm578_vm0, %v2105_v21 }
  0x8e   : > { %709 = vmatprep.mubr.bf16.mxu0 %v2605_v0  ;;  %902 = vmatprep.mubr.bf16.mxu1 %v2605_v0 }
  0x95   : > { %1977 = vmatmul.mubr.msk.bf16.gmra.mrb[20].mxu0 %vm578_vm0, %v2106_v22  ;;  %1993 = vmatmul.mubr.msk.bf16.gmra.mrb[20].mxu1 %vm578_vm0, %v2106_v22 }
  0x96   : > { %719 = vmatprep.mubr.bf16.mxu0 %v2605_v0  ;;  %912 = vmatprep.mubr.bf16.mxu1 %v2605_v0 }
  0x9d   : > { %1978 = vmatmul.mubr.msk.bf16.gmra.mrb[24].mxu0 %vm578_vm0, %v2107_v23  ;;  %1994 = vmatmul.mubr.msk.bf16.gmra.mrb[24].mxu1 %vm578_vm0, %v2107_v23 }
  0x9e   : > { %729 = vmatprep.mubr.bf16.mxu0 %v2605_v0  ;;  %922 = vmatprep.mubr.bf16.mxu1 %v2605_v0 }
  0xa5   : > { %1979 = vmatmul.mubr.msk.bf16.gmra.mrb[28].mxu0 %vm578_vm0, %v2108_v24  ;;  %1995 = vmatmul.mubr.msk.bf16.gmra.mrb[28].mxu1 %vm578_vm0, %v2108_v24 }
  0xa6   : > { %739 = vmatprep.mubr.bf16.mxu0 %v2605_v0  ;;  %932 = vmatprep.mubr.bf16.mxu1 %v2605_v0 }
  0xad   : > { %1980 = vmatmul.mubr.msk.bf16.gmra.mrb[32].mxu0 %vm578_vm0, %v2109_v25  ;;  %1996 = vmatmul.mubr.msk.bf16.gmra.mrb[32].mxu1 %vm578_vm0, %v2109_v25 }
  0xae   : > { %749 = vmatprep.mubr.bf16.mxu0 %v2605_v0  ;;  %942 = vmatprep.mubr.bf16.mxu1 %v2605_v0 }
  0xb5   : > { %1981 = vmatmul.mubr.msk.bf16.gmra.mrb[36].mxu0 %vm578_vm0, %v2110_v26  ;;  %1997 = vmatmul.mubr.msk.bf16.gmra.mrb[36].mxu1 %vm578_vm0, %v2110_v26 }
  0xb6   : > { %759 = vmatprep.mubr.bf16.mxu0 %v2605_v0  ;;  %952 = vmatprep.mubr.bf16.mxu1 %v2605_v0 }
  0xbd   : > { %1982 = vmatmul.mubr.msk.bf16.gmra.mrb[40].mxu0 %vm578_vm0, %v2111_v27  ;;  %1998 = vmatmul.mubr.msk.bf16.gmra.mrb[40].mxu1 %vm578_vm0, %v2111_v27 }
  0xbe   : > { %769 = vmatprep.mubr.bf16.mxu0 %v2605_v0  ;;  %962 = vmatprep.mubr.bf16.mxu1 %v2605_v0 }
  0xc5   : > { %1983 = vmatmul.mubr.msk.bf16.gmra.mrb[44].mxu0 %vm578_vm0, %v2112_v28  ;;  %1999 = vmatmul.mubr.msk.bf16.gmra.mrb[44].mxu1 %vm578_vm0, %v2112_v28 }
  0xc6   : > { %779 = vmatprep.mubr.bf16.mxu0 %v2605_v0  ;;  %972 = vmatprep.mubr.bf16.mxu1 %v2605_v0 }
  0xcd   : > { %1984 = vmatmul.mubr.msk.bf16.gmra.mrb[48].mxu0 %vm578_vm0, %v2113_v29  ;;  %2000 = vmatmul.mubr.msk.bf16.gmra.mrb[48].mxu1 %vm578_vm0, %v2113_v29 }
  0xce   : > { %789 = vmatprep.mubr.bf16.mxu0 %v2605_v0  ;;  %982 = vmatprep.mubr.bf16.mxu1 %v2605_v0 }
  0xd5   : > { %1985 = vmatmul.mubr.msk.bf16.gmra.mrb[52].mxu0 %vm578_vm0, %v2114_v30  ;;  %2001 = vmatmul.mubr.msk.bf16.gmra.mrb[52].mxu1 %vm578_vm0, %v2114_v30 }
  0xd6   : > { %799 = vmatprep.mubr.bf16.mxu0 %v2605_v0  ;;  %992 = vmatprep.mubr.bf16.mxu1 %v2605_v0 }
  0xdd   : > { %1986 = vmatmul.mubr.msk.bf16.gmra.mrb[56].mxu0 %vm578_vm0, %v2115_v31  ;;  %2002 = vmatmul.mubr.msk.bf16.gmra.mrb[56].mxu1 %vm578_vm0, %v2115_v31 }
  0xde   : > { %809 = vmatprep.mubr.bf16.mxu0 %v2605_v0  ;;  %1002 = vmatprep.mubr.bf16.mxu1 %v2605_v0 }
  0xe5   : > { %1987 = vmatmul.mubr.msk.bf16.gmra.mrb[60].mxu0 %vm578_vm0, %v2116_v32  ;;  %2003 = vmatmul.mubr.msk.bf16.gmra.mrb[60].mxu1 %vm578_vm0, %v2116_v32 }
 0x140   : > { %v661_v44 = vpop.f32.mrb[0].mxu0  ;;  %v854_v45 = vpop.f32.mrb[0].mxu1 }
 0x141   : > { %v662_v46 = vadd.f32 %v661_v44, %v2963_v40  ;;  %v855_v47 = vadd.f32 %v854_v45, %v2965_v41  ;;  %v663_v48 = vpop.f32.mrb[1].mxu0  ;;  %v856_v49 = vpop.f32.mrb[1].mxu1 }
 0x142   : > { %v664_v50 = vadd.f32 %v663_v48, %v2967_v42  ;;  %v857_v51 = vadd.f32 %v856_v49, %v2969_v43  ;;  %v665_v52 = vpop.f32.mrb[2].mxu0  ;;  %v858_v53 = vpop.f32.mrb[2].mxu1  ;;  %v1461_v49 = vld [vmem:[%s2812_s28] sm:$0xff] }
 0x143   : > { %v1013_v54 = vmul.f32 0.5, %v662_v46  ;;  %v1269_v55 = vmul.f32 0.5, %v855_v47  ;;  %v666_v56 = vadd.f32 %v665_v52, %v2963_v40  ;;  %v859_v57 = vadd.f32 %v858_v53, %v2965_v41  ;;  %v667_v58 = vpop.f32.mrb[3].mxu0  ;;  %v860_v59 = vpop.f32.mrb[3].mxu1 }
 0x144   : > { %v1141_v60 = vmul.f32 0.5, %v664_v50  ;;  %2117 = vtanh.f32 %v857_v51  ;;  %v668_v61 = vadd.f32 %v667_v58, %v2967_v42  ;;  %v861_v1 = vadd.f32 %v860_v59, %v2969_v43 }
 0x145   : > { %2119 = vtanh.f32 %v1013_v54  ;;  %v1014_v62 = vmul.f32 0.5, %v666_v56  ;;  %v1270_v63 = vmul.f32 0.5, %v859_v57 }
 0x146   : > { %2121 = vtanh.f32 %v1269_v55  ;;  %v1142_v0 = vmul.f32 0.5, %v668_v61 }
 0x147   : > { %2123 = vtanh.f32 %v1141_v60 }
 0x148   : > { %2125 = vtanh.f32 %v1014_v62  ;;  %v671_v2 = vpop.f32.mrb[4].mxu0  ;;  %v864_v3 = vpop.f32.mrb[4].mxu1  ;;  %v1558_v62 = vld [vmem:[%s2820_s11 + $0x8] sm:$0xff] }
 0x149   : > { %2127 = vtanh.f32 %v1270_v63  ;;  %v672_v4 = vadd.f32 %v671_v2, %v2963_v40  ;;  %v865_v5 = vadd.f32 %v864_v3, %v2965_v41  ;;  %v673_v6 = vpop.f32.mrb[5].mxu0  ;;  %v866_v7 = vpop.f32.mrb[5].mxu1  ;;  %v1462_v3 = vld [vmem:[%s2812_s28 + $0x8] sm:$0xff] }
 0x14a   : > { %2129 = vtanh.f32 %v1142_v0  ;;  %v674_v8 = vadd.f32 %v673_v6, %v2967_v42  ;;  %v867_v9 = vadd.f32 %v866_v7, %v2969_v43  ;;  %v675_v10 = vpop.f32.mrb[6].mxu0  ;;  %v868_v11 = vpop.f32.mrb[6].mxu1 }
 0x14b   : > { %2131 = vtanh.f32 %v861_v1  ;;  %v1015_v12 = vmul.f32 0.5, %v672_v4  ;;  %v1271_v13 = vmul.f32 0.5, %v865_v5  ;;  %v676_v14 = vadd.f32 %v675_v10, %v2963_v40  ;;  %v677_v15 = vpop.f32.mrb[7].mxu0  ;;  %v870_v16 = vpop.f32.mrb[7].mxu1 }
 0x14c   : > { %v1143_v17 = vmul.f32 0.5, %v674_v8  ;;  %2133 = vtanh.f32 %v867_v9  ;;  %v869_v18 = vadd.f32 %v868_v11, %v2965_v41  ;;  %v678_v19 = vadd.f32 %v677_v15, %v2967_v42 }
 0x14d   : > { %2135 = vtanh.f32 %v1015_v12  ;;  %v1016_v20 = vmul.f32 0.5, %v676_v14  ;;  %v871_v25 = vadd.f32 %v870_v16, %v2969_v43 }
 0x14e   : > { %v2118_v21 = vpop.eup %2117  ;;  %2137 = vtanh.f32 %v1271_v13  ;;  %v1272_v22 = vmul.f32 0.5, %v869_v18  ;;  %v1144_v23 = vmul.f32 0.5, %v678_v19 }
 0x14f   : > { %v2120_v24 = vpop.eup %2119  ;;  %2139 = vtanh.f32 %v1143_v17 }
 0x150   : > { %v2122_v26 = vpop.eup %2121  ;;  %v1077_v27 = vadd.f32 1.0, %v2120_v24  ;;  %2141 = vtanh.f32 %v1016_v20  ;;  %v681_v28 = vpop.f32.mrb[8].mxu0 }
 0x151   : > { %v874_v29 = vpop.f32.mrb[8].mxu1  ;;  %v2124_v30 = vpop.eup %2123  ;;  %v1333_v31 = vadd.f32 1.0, %v2122_v26  ;;  %2143 = vtanh.f32 %v1272_v22  ;;  %v682_v32 = vadd.f32 %v681_v28, %v2963_v40 }
 0x152   : > { %v875_v33 = vadd.f32 %v874_v29, %v2965_v41  ;;  %v683_v34 = vpop.f32.mrb[9].mxu0  ;;  %v876_v35 = vpop.f32.mrb[9].mxu1  ;;  %v1109_v37 = vmul.f32 0.5, %v1077_v27  ;;  %v1205_v39 = vadd.f32 1.0, %v2124_v30  ;;  %2145 = vtanh.f32 %v1144_v23 }
 0x153   : > { %v2126_v36 = vpop.eup %2125  ;;  %v684_v44 = vadd.f32 %v683_v34, %v2967_v42  ;;  %v685_v45 = vpop.f32.mrb[10].mxu0  ;;  %v1365_v48 = vmul.f32 0.5, %v1333_v31  ;;  %2147 = vtanh.f32 %v871_v25  ;;  %v1017_v51 = vmul.f32 0.5, %v682_v32  ;;  %v1559_v25 = vld [vmem:[%s2820_s11 + $0x10] sm:$0xff] }
 0x154   : > { %v878_v46 = vpop.f32.mrb[10].mxu1  ;;  %v2128_v47 = vpop.eup %2127  ;;  %v1078_v50 = vadd.f32 1.0, %v2126_v36  ;;  %v1237_v55 = vmul.f32 0.5, %v1205_v39  ;;  %v1429_v56 = vmul.f32 %v2118_v21, %v1109_v37  ;;  %v1273_v58 = vmul.f32 0.5, %v875_v33  ;;  %v1463_v33 = vld [vmem:[%s2812_s28 + $0x10] sm:$0xff] }
 0x155   : > { %v2992_v52 = vpop.f32.mrb[11].mxu0  ;;  %v2994_v53 = vpop.f32.mrb[11].mxu1  ;;  %v1334_v57 = vadd.f32 1.0, %v2128_v47  ;;  %v1589_v60 = vmul.f32 %v1557_v38, %v1365_v48  ;;  %2149 = vtanh.f32 %v1017_v51  ;;  %v1145_v4 = vmul.f32 0.5, %v684_v44 }
 0x156   : > { %v2130_v54 = vpop.eup %2129  ;;  %v1110_v61 = vmul.f32 0.5, %v1078_v50  ;;  %v1493_v1 = vmul.f32 %v1461_v49, %v1237_v55  ;;  %2151 = vtanh.f32 %v1273_v58  ;;  %v877_v8 = vadd.f32 %v876_v35, %v2969_v43  ;;  %v1560_v49 = vld [vmem:[%s2820_s11 + $0x18] sm:$0xff] }
 0x157   : > { %v2132_v59 = vpop.eup %2131  ;;  %v1206_v63 = vadd.f32 1.0, %v2130_v54  ;;  %v1366_v2 = vmul.f32 0.5, %v1334_v57  ;;  %v686_v9 = vadd.f32 %v685_v45, %v2963_v40  ;;  %2153 = vtanh.f32 %v1145_v4  ;;  %v1464_v55 = vld [vmem:[%s2812_s28 + $0x18] sm:$0xff] }
 0x158   : > { %v2134_v0 = vpop.eup %2133  ;;  %v1430_v7 = vmul.f32 %v2132_v59, %v1110_v61  ;;  %v1525_v11 = vadd.f32 %v1493_v1, %v1429_v56  ;;  %v3000_v14 = vpop.f32.mrb[12].mxu0  ;;  %2155 = vtanh.f32 %v877_v8  ;;  %v879_v27 = vadd.f32 %v878_v46, %v2965_v41 }
 0x159   : > { %v2136_v5 = vpop.eup %2135  ;;  %v1238_v6 = vmul.f32 0.5, %v1206_v63  ;;  %v1590_v12 = vmul.f32 %v1558_v62, %v1366_v2  ;;  %v3002_v15 = vpop.f32.mrb[12].mxu1  ;;  %v1018_v19 = vmul.f32 0.5, %v686_v9  ;;  %v688_v57 = vadd.f32 %v2992_v52, %v2967_v42 }
 0x15a   : > { %v2138_v10 = vpop.eup %2137  ;;  %v1079_v13 = vadd.f32 1.0, %v2136_v5  ;;  %v3004_v20 = vpop.f32.mrb[13].mxu0  ;;  %v1621_v23 = vadd.f32 %v1589_v60, %v1525_v11  ;;  %v1274_v56 = vmul.f32 0.5, %v879_v27  ;;  %v881_v61 = vadd.f32 %v2994_v53, %v2969_v43 }
 0x15b   : > { %v2140_v16 = vpop.eup %2139  ;;  %v1494_v17 = vmul.f32 %v1462_v3, %v1238_v6  ;;  %v1335_v18 = vadd.f32 1.0, %v2138_v10  ;;  %v3006_v21 = vpop.f32.mrb[13].mxu1  ;;  %2157 = vtanh.f32 %v1018_v19  ;;  %v1146_v5 = vmul.f32 0.5, %v688_v57  ;;  %v1561_v10 = vld [vmem:[%s2820_s11 + $0x20] sm:$0xff] }
 0x15c   : > { %v2142_v22 = vpop.eup %2141  ;;  %v1111_v24 = vmul.f32 0.5, %v1079_v13  ;;  %v1207_v26 = vadd.f32 1.0, %v2140_v16  ;;  %v3010_v28 = vpop.f32.mrb[14].mxu0  ;;  %1653 = vst [vmem:[%s3020_s14] sm:$0xff] %v1621_v23  ;;  %2159 = vtanh.f32 %v1621_v23  ;;  %v692_v11 = vadd.f32 %v3000_v14, %v2963_v40  ;;  %v1465_v14 = vld [vmem:[%s2812_s28 + $0x20] sm:$0xff] }
 0x15d   : > { %v3012_v29 = vpop.f32.mrb[14].mxu1  ;;  %v2144_v30 = vpop.eup %2143  ;;  %v1526_v31 = vadd.f32 %v1494_v17, %v1430_v7  ;;  %v1367_v32 = vmul.f32 0.5, %v1335_v18  ;;  %v1080_v34 = vadd.f32 1.0, %v2142_v22 }
 0x15e   : > { %v3015_v35 = vpop.f32.mrb[15].mxu0  ;;  %v3017_v36 = vpop.f32.mrb[15].mxu1  ;;  %v1239_v38 = vmul.f32 0.5, %v1207_v26  ;;  %v1431_v39 = vmul.f32 %v2134_v0, %v1111_v24  ;;  %v1336_v44 = vadd.f32 1.0, %v2144_v30 }
 0x15f   : > { %v2146_v37 = vpop.eup %2145  ;;  %v1622_v46 = vadd.f32 %v1590_v12, %v1526_v31  ;;  %v1591_v47 = vmul.f32 %v1559_v25, %v1367_v32  ;;  %v1112_v48 = vmul.f32 0.5, %v1080_v34  ;;  %v885_v12 = vadd.f32 %v3002_v15, %v2965_v41 }
 0x160   : > { %v2148_v45 = vpop.eup %2147  ;;  %v1208_v50 = vadd.f32 1.0, %v2146_v37  ;;  %v1495_v51 = vmul.f32 %v1463_v33, %v1239_v38  ;;  %v1368_v54 = vmul.f32 0.5, %v1336_v44  ;;  %v3030_v2 = vpop.f32.mrb[16].mxu0  ;;  %v1019_v15 = vmul.f32 0.5, %v692_v11 }
 0x161   : > { %v2150_v58 = vpop.eup %2149  ;;  %1654 = vst [vmem:[%s3020_s14 + $0x8] sm:$0xff] %v1622_v46  ;;  %2161 = vtanh.f32 %v1622_v46  ;;  %v1432_v60 = vmul.f32 %v2148_v45, %v1112_v48  ;;  %v3032_v3 = vpop.f32.mrb[16].mxu1  ;;  %v1275_v26 = vmul.f32 0.5, %v885_v12  ;;  %v694_v33 = vadd.f32 %v3004_v20, %v2967_v42 }
 0x162   : > { %v1240_v59 = vmul.f32 0.5, %v1208_v50  ;;  %v2152_v62 = vpop.eup %2151  ;;  %v1527_v63 = vadd.f32 %v1495_v51, %v1431_v39  ;;  %v1592_v0 = vmul.f32 %v1560_v49, %v1368_v54  ;;  %v1081_v1 = vadd.f32 1.0, %v2150_v58  ;;  %v3034_v6 = vpop.f32.mrb[17].mxu0 }
 0x163   : > { %2163 = vtanh.f32 %v1274_v56  ;;  %v1337_v52 = vadd.f32 1.0, %v2152_v62  ;;  %v3036_v7 = vpop.f32.mrb[17].mxu1  ;;  %v2154_v53 = vpop.eup %2153  ;;  %v887_v38 = vadd.f32 %v3006_v21, %v2969_v43  ;;  %v696_v39 = vadd.f32 %v3010_v28, %v2963_v40 }
 0x164   : > { %v1496_v4 = vmul.f32 %v1464_v55, %v1240_v59  ;;  %2165 = vtanh.f32 %v881_v61  ;;  %v1623_v8 = vadd.f32 %v1591_v47, %v1527_v63  ;;  %v1113_v9 = vmul.f32 0.5, %v1081_v1  ;;  %v3043_v13 = vpop.f32.mrb[18].mxu0  ;;  %v3045_v16 = vpop.f32.mrb[18].mxu1 }
 0x165   : > { %v2156_v17 = vpop.eup %2155  ;;  %v1369_v19 = vmul.f32 0.5, %v1337_v52  ;;  %v1209_v22 = vadd.f32 1.0, %v2154_v53  ;;  %2167 = vtanh.f32 %v1146_v5  ;;  %v3047_v23 = vpop.f32.mrb[19].mxu0  ;;  %v1147_v45 = vmul.f32 0.5, %v694_v33 }
 0x166   : > { %v1528_v18 = vadd.f32 %v1496_v4, %v1432_v60  ;;  %v3049_v24 = vpop.f32.mrb[19].mxu1  ;;  %1655 = vst [vmem:[%s3020_s14 + $0x10] sm:$0xff] %v1623_v8  ;;  %2169 = vtanh.f32 %v1623_v8  ;;  %v1433_v25 = vmul.f32 %v2156_v17, %v1113_v9  ;;  %v2158_v27 = vpop.eup %2157  ;;  %v889_v20 = vadd.f32 %v3012_v29, %v2965_v41 }
 0x167   : > { %v1593_v31 = vmul.f32 %v1561_v10, %v1369_v19  ;;  %v1241_v32 = vmul.f32 0.5, %v1209_v22  ;;  %v2160_v34 = vpop.eup %2159  ;;  %v1082_v37 = vadd.f32 1.0, %v2158_v27  ;;  %2171 = vtanh.f32 %v1019_v15 }
 0x168   : > { %v1624_v30 = vadd.f32 %v1592_v0, %v1528_v18  ;;  %1717 = vst [vmem:[%s3060_s7] sm:$0xff] %v2160_v34  ;;  %v1020_v47 = vmul.f32 0.5, %v696_v39  ;;  %v698_v21 = vadd.f32 %v3015_v35, %v2967_v42  ;;  %v711_v48 = vpop.f32.mrb[20].mxu0  ;;  %v3068_v28 = vpop.f32.mrb[20].mxu1  ;;  %v1276_v51 = vmul.f32 0.5, %v889_v20  ;;  %v1466_v18 = vld [vmem:[%s2812_s28 + $0x28] sm:$0xff] }
 0x169   : > { %v1497_v44 = vmul.f32 %v1465_v14, %v1241_v32  ;;  %v1114_v46 = vmul.f32 0.5, %v1082_v37  ;;  %v891_v54 = vadd.f32 %v3017_v36, %v2969_v43  ;;  %v713_v55 = vpop.f32.mrb[21].mxu0  ;;  %v3072_v56 = vpop.f32.mrb[21].mxu1  ;;  %v702_v35 = vadd.f32 %v3030_v2, %v2963_v40  ;;  %v1562_v2 = vld [vmem:[%s2820_s11 + $0x28] sm:$0xff] }
 0x16a   : > { %1656 = vst [vmem:[%s3020_s14 + $0x18] sm:$0xff] %v1624_v30  ;;  %2173 = vtanh.f32 %v1624_v30  ;;  %v1148_v57 = vmul.f32 0.5, %v698_v21  ;;  %v895_v58 = vadd.f32 %v3032_v3, %v2965_v41  ;;  %v3079_v59 = vpop.f32.mrb[22].mxu0  ;;  %v3081_v60 = vpop.f32.mrb[22].mxu1  ;;  %v704_v63 = vadd.f32 %v3034_v6, %v2967_v42 }
 0x16b   : > { %2175 = vtanh.f32 %v1275_v26  ;;  %v2162_v49 = vpop.eup %2161  ;;  %v1529_v50 = vadd.f32 %v1497_v44, %v1433_v25  ;;  %v3085_v0 = vpop.f32.mrb[23].mxu0  ;;  %v1021_v3 = vmul.f32 0.5, %v702_v35  ;;  %v897_v9 = vadd.f32 %v3036_v7, %v2969_v43 }
 0x16c   : > { %2177 = vtanh.f32 %v1147_v45  ;;  %1718 = vst [vmem:[%s3060_s7 + $0x8] sm:$0xff] %v2162_v49  ;;  %v3087_v1 = vpop.f32.mrb[23].mxu1  ;;  %v1277_v52 = vmul.f32 0.5, %v895_v58  ;;  %v1149_v8 = vmul.f32 0.5, %v704_v63  ;;  %v706_v11 = vadd.f32 %v3043_v13, %v2963_v40 }
 0x16d   : > { %v2164_v29 = vpop.eup %2163  ;;  %2179 = vtanh.f32 %v887_v38  ;;  %v1625_v61 = vadd.f32 %v1593_v31, %v1529_v50  ;;  %v899_v12 = vadd.f32 %v3045_v16, %v2965_v41  ;;  %v708_v19 = vadd.f32 %v3047_v23, %v2967_v42  ;;  %v1563_v50 = vld [vmem:[%s2820_s11 + $0x30] sm:$0xff] }
 0x16e   : > { %v2166_v36 = vpop.eup %2165  ;;  %v1338_v62 = vadd.f32 1.0, %v2164_v29  ;;  %2181 = vtanh.f32 %v1020_v47  ;;  %v901_v22 = vadd.f32 %v3049_v24, %v2969_v43  ;;  %v1022_v25 = vmul.f32 0.5, %v706_v11  ;;  %v1467_v29 = vld [vmem:[%s2812_s28 + $0x30] sm:$0xff] }
 0x16f   : > { %v1434_v4 = vmul.f32 %v2166_v36, %v1114_v46  ;;  %2183 = vtanh.f32 %v1276_v51  ;;  %v2168_v5 = vpop.eup %2167  ;;  %1657 = vst [vmem:[%s3020_s14 + $0x20] sm:$0xff] %v1625_v61  ;;  %v1278_v15 = vmul.f32 0.5, %v899_v12  ;;  %v1150_v30 = vmul.f32 0.5, %v708_v19 }
 0x170   : > { %2185 = vtanh.f32 %v1625_v61  ;;  %v1370_v53 = vmul.f32 0.5, %v1338_v62  ;;  %v2170_v6 = vpop.eup %2169  ;;  %v1210_v10 = vadd.f32 1.0, %v2168_v5  ;;  %v3103_v13 = vpop.f32.mrb[24].mxu0  ;;  %v712_v31 = vadd.f32 %v711_v48, %v2963_v40 }
 0x171   : > { %2187 = vtanh.f32 %v1148_v57  ;;  %1719 = vst [vmem:[%s3060_s7 + $0x10] sm:$0xff] %v2170_v6  ;;  %v2172_v7 = vpop.eup %2171  ;;  %v3105_v26 = vpop.f32.mrb[24].mxu1  ;;  %v905_v34 = vadd.f32 %v3068_v28, %v2965_v41  ;;  %v714_v37 = vadd.f32 %v713_v55, %v2967_v42 }
 0x172   : > { %v1594_v17 = vmul.f32 %v1562_v2, %v1370_v53  ;;  %2189 = vtanh.f32 %v891_v54  ;;  %v1242_v14 = vmul.f32 0.5, %v1210_v10  ;;  %v1083_v27 = vadd.f32 1.0, %v2172_v7  ;;  %v3108_v23 = vpop.f32.mrb[25].mxu0  ;;  %v3110_v32 = vpop.f32.mrb[25].mxu1 }
 0x173   : > { %2191 = vtanh.f32 %v1021_v3  ;;  %v3116_v38 = vpop.f32.mrb[26].mxu0  ;;  %v3118_v39 = vpop.f32.mrb[26].mxu1  ;;  %v1023_v46 = vmul.f32 0.5, %v712_v31  ;;  %v1279_v51 = vmul.f32 0.5, %v905_v34  ;;  %v1151_v35 = vmul.f32 0.5, %v714_v37 }
 0x174   : > { %v2174_v16 = vpop.eup %2173  ;;  %2193 = vtanh.f32 %v1277_v52  ;;  %v1498_v33 = vmul.f32 %v1466_v18, %v1242_v14  ;;  %v1115_v45 = vmul.f32 0.5, %v1083_v27  ;;  %v3120_v47 = vpop.f32.mrb[27].mxu0  ;;  %v907_v3 = vadd.f32 %v3072_v56, %v2969_v43  ;;  %v1468_v14 = vld [vmem:[%s2812_s28 + $0x38] sm:$0xff] }
 0x175   : > { %v2176_v24 = vpop.eup %2175  ;;  %1720 = vst [vmem:[%s3060_s7 + $0x18] sm:$0xff] %v2174_v16  ;;  %2195 = vtanh.f32 %v1149_v8  ;;  %v3122_v21 = vpop.f32.mrb[27].mxu1  ;;  %v1564_v8 = vld [vmem:[%s2820_s11 + $0x38] sm:$0xff]  ;;  %v909_v56 = vadd.f32 %v3081_v60, %v2965_v41 }
 0x176   : > { %v2178_v44 = vpop.eup %2177  ;;  %v1339_v20 = vadd.f32 1.0, %v2176_v24  ;;  %2197 = vtanh.f32 %v897_v9  ;;  %v1530_v49 = vadd.f32 %v1498_v33, %v1434_v4  ;;  %v716_v9 = vadd.f32 %v3079_v59, %v2963_v40 }
 0x177   : > { %v2180_v48 = vpop.eup %2179  ;;  %v1211_v28 = vadd.f32 1.0, %v2178_v44  ;;  %2199 = vtanh.f32 %v1022_v25 }
 0x178   : > { %v2182_v54 = vpop.eup %2181  ;;  %v1371_v55 = vmul.f32 0.5, %v1339_v20  ;;  %v1435_v57 = vmul.f32 %v2180_v48, %v1115_v45  ;;  %2201 = vtanh.f32 %v1278_v15  ;;  %v1626_v36 = vadd.f32 %v1594_v17, %v1530_v49  ;;  %v3133_v6 = vpop.f32.mrb[28].mxu0  ;;  %v1565_v49 = vld [vmem:[%s2820_s11 + $0x40] sm:$0xff] }
 0x179   : > { %v2184_v58 = vpop.eup %2183  ;;  %v1243_v61 = vmul.f32 0.5, %v1211_v28  ;;  %v1084_v62 = vadd.f32 1.0, %v2182_v54  ;;  %2203 = vtanh.f32 %v1150_v30  ;;  %v3135_v10 = vpop.f32.mrb[28].mxu1  ;;  %v1024_v59 = vmul.f32 0.5, %v716_v9  ;;  %v1469_v54 = vld [vmem:[%s2812_s28 + $0x40] sm:$0xff] }
 0x17a   : > { %v2186_v63 = vpop.eup %2185  ;;  %v1595_v2 = vmul.f32 %v1563_v50, %v1371_v55  ;;  %v1340_v4 = vadd.f32 1.0, %v2184_v58  ;;  %2205 = vtanh.f32 %v901_v22  ;;  %1658 = vst [vmem:[%s3020_s14 + $0x28] sm:$0xff] %v1626_v36  ;;  %v3139_v18 = vpop.f32.mrb[29].mxu0  ;;  %v1280_v45 = vmul.f32 0.5, %v909_v56 }
 0x17b   : > { %v2188_v52 = vpop.eup %2187  ;;  %1721 = vst [vmem:[%s3060_s7 + $0x20] sm:$0xff] %v2186_v63  ;;  %2207 = vtanh.f32 %v1626_v36  ;;  %v1499_v5 = vmul.f32 %v1467_v29, %v1243_v61  ;;  %v1116_v53 = vmul.f32 0.5, %v1084_v62  ;;  %v3141_v19 = vpop.f32.mrb[29].mxu1  ;;  %v718_v55 = vadd.f32 %v3085_v0, %v2967_v42 }
 0x17c   : > { %v2190_v11 = vpop.eup %2189  ;;  %v1372_v12 = vmul.f32 0.5, %v1340_v4  ;;  %v1212_v17 = vadd.f32 1.0, %v2188_v52  ;;  %2209 = vtanh.f32 %v1023_v46  ;;  %v3144_v15 = vpop.f32.mrb[30].mxu0  ;;  %v911_v29 = vadd.f32 %v3087_v1, %v2969_v43 }
 0x17d   : > { %v2192_v22 = vpop.eup %2191  ;;  %v1531_v7 = vadd.f32 %v1499_v5, %v1435_v57  ;;  %v1436_v25 = vmul.f32 %v2190_v11, %v1116_v53  ;;  %2211 = vtanh.f32 %v1279_v51  ;;  %v3146_v16 = vpop.f32.mrb[30].mxu1  ;;  %v1152_v4 = vmul.f32 0.5, %v718_v55 }
 0x17e   : > { %v2194_v27 = vpop.eup %2193  ;;  %v1596_v30 = vmul.f32 %v1564_v8, %v1372_v12  ;;  %v1244_v31 = vmul.f32 0.5, %v1212_v17  ;;  %v1085_v24 = vadd.f32 1.0, %v2192_v22  ;;  %2213 = vtanh.f32 %v1151_v35  ;;  %v3148_v60 = vpop.f32.mrb[31].mxu0  ;;  %v1566_v8 = vld [vmem:[%s2820_s11 + $0x48] sm:$0xff] }
 0x17f   : > { %v3150_v33 = vpop.f32.mrb[31].mxu1  ;;  %v2196_v34 = vpop.eup %2195  ;;  %v1627_v37 = vadd.f32 %v1595_v2, %v1531_v7  ;;  %v1341_v44 = vadd.f32 1.0, %v2194_v27  ;;  %2215 = vtanh.f32 %v907_v3  ;;  %v1470_v22 = vld [vmem:[%s2812_s28 + $0x48] sm:$0xff]  ;;  %v722_v7 = vadd.f32 %v3103_v13, %v2963_v40 }
 0x180   : > { %v2198_v20 = vpop.eup %2197  ;;  %v1500_v46 = vmul.f32 %v1468_v14, %v1244_v31  ;;  %v1117_v48 = vmul.f32 0.5, %v1085_v24  ;;  %v1213_v50 = vadd.f32 1.0, %v2196_v34  ;;  %2217 = vtanh.f32 %v1024_v59  ;;  %v3159_v3 = vpop.f32.mrb[32].mxu0 }
 0x181   : > { %v2200_v28 = vpop.eup %2199  ;;  %1659 = vst [vmem:[%s3020_s14 + $0x30] sm:$0xff] %v1627_v37  ;;  %2219 = vtanh.f32 %v1627_v37  ;;  %v1373_v51 = vmul.f32 0.5, %v1341_v44  ;;  %v3161_v52 = vpop.f32.mrb[32].mxu1  ;;  %v915_v14 = vadd.f32 %v3105_v26, %v2965_v41 }
 0x182   : > { %v2202_v57 = vpop.eup %2201  ;;  %v1532_v35 = vadd.f32 %v1500_v46, %v1436_v25  ;;  %v1245_v58 = vmul.f32 0.5, %v1213_v50  ;;  %v1437_v36 = vmul.f32 %v2198_v20, %v1117_v48  ;;  %v1086_v61 = vadd.f32 1.0, %v2200_v28  ;;  %v3164_v11 = vpop.f32.mrb[33].mxu0 }
 0x183   : > { %v2204_v62 = vpop.eup %2203  ;;  %v1597_v63 = vmul.f32 %v1565_v49, %v1373_v51  ;;  %v1342_v2 = vadd.f32 1.0, %v2202_v57  ;;  %2221 = vtanh.f32 %v1280_v45  ;;  %v3166_v12 = vpop.f32.mrb[33].mxu1  ;;  %v1025_v45 = vmul.f32 0.5, %v722_v7 }
 0x184   : > { %v2206_v0 = vpop.eup %2205  ;;  %v1628_v5 = vadd.f32 %v1596_v30, %v1532_v35  ;;  %v1501_v1 = vmul.f32 %v1469_v54, %v1245_v58  ;;  %v1118_v53 = vmul.f32 0.5, %v1086_v61  ;;  %v1214_v9 = vadd.f32 1.0, %v2204_v62  ;;  %v3173_v25 = vpop.f32.mrb[34].mxu0  ;;  %v1567_v54 = vld [vmem:[%s2820_s11 + $0x50] sm:$0xff] }
 0x185   : > { %v2208_v17 = vpop.eup %2207  ;;  %v1374_v56 = vmul.f32 0.5, %v1342_v2  ;;  %2223 = vtanh.f32 %v1152_v4  ;;  %v3175_v59 = vpop.f32.mrb[34].mxu1  ;;  %v1281_v50 = vmul.f32 0.5, %v915_v14  ;;  %v724_v57 = vadd.f32 %v3108_v23, %v2967_v42 }
 0x186   : > { %v2210_v27 = vpop.eup %2209  ;;  %1722 = vst [vmem:[%s3060_s7 + $0x28] sm:$0xff] %v2208_v17  ;;  %1660 = vst [vmem:[%s3020_s14 + $0x38] sm:$0xff] %v1628_v5  ;;  %2225 = vtanh.f32 %v1628_v5  ;;  %v1533_v30 = vadd.f32 %v1501_v1, %v1437_v36  ;;  %v1246_v31 = vmul.f32 0.5, %v1214_v9  ;;  %v1438_v24 = vmul.f32 %v2206_v0, %v1118_v53  ;;  %v3179_v34 = vpop.f32.mrb[35].mxu0  ;;  %v1471_v36 = vld [vmem:[%s2812_s28 + $0x50] sm:$0xff] }
 0x187   : > { %v3181_v37 = vpop.f32.mrb[35].mxu1  ;;  %v2212_v13 = vpop.eup %2211  ;;  %v1598_v44 = vmul.f32 %v1566_v8, %v1374_v56  ;;  %v1087_v26 = vadd.f32 1.0, %v2210_v27  ;;  %2227 = vtanh.f32 %v911_v29  ;;  %v917_v61 = vadd.f32 %v3110_v32, %v2969_v43 }
 0x188   : > { %v2214_v20 = vpop.eup %2213  ;;  %v1629_v46 = vadd.f32 %v1597_v63, %v1533_v30  ;;  %v1502_v48 = vmul.f32 %v1470_v22, %v1246_v31  ;;  %v1343_v49 = vadd.f32 1.0, %v2212_v13  ;;  %2229 = vtanh.f32 %v1025_v45  ;;  %v3190_v0 = vpop.f32.mrb[36].mxu0 }
 0x189   : > { %v2216_v28 = vpop.eup %2215  ;;  %v1119_v51 = vmul.f32 0.5, %v1087_v26  ;;  %v1215_v55 = vadd.f32 1.0, %v2214_v20  ;;  %v3192_v5 = vpop.f32.mrb[36].mxu1  ;;  %v1153_v53 = vmul.f32 0.5, %v724_v57  ;;  %v726_v22 = vadd.f32 %v3116_v38, %v2963_v40  ;;  %v1568_v26 = vld [vmem:[%s2820_s11 + $0x58] sm:$0xff] }
 0x18a   : > { %v2218_v35 = vpop.eup %2217  ;;  %1661 = vst [vmem:[%s3020_s14 + $0x40] sm:$0xff] %v1629_v46  ;;  %2231 = vtanh.f32 %v1629_v46  ;;  %v1534_v29 = vadd.f32 %v1502_v48, %v1438_v24  ;;  %v1375_v58 = vmul.f32 0.5, %v1343_v49  ;;  %v3195_v8 = vpop.f32.mrb[37].mxu0  ;;  %v919_v7 = vadd.f32 %v3118_v39, %v2965_v41 }
 0x18b   : > { %v2220_v62 = vpop.eup %2219  ;;  %v1247_v63 = vmul.f32 0.5, %v1215_v55  ;;  %v1439_v2 = vmul.f32 %v2216_v28, %v1119_v51  ;;  %v1088_v4 = vadd.f32 1.0, %v2218_v35  ;;  %2233 = vtanh.f32 %v1281_v50  ;;  %v3197_v9 = vpop.f32.mrb[37].mxu1  ;;  %v1472_v28 = vld [vmem:[%s2812_s28 + $0x58] sm:$0xff] }
 0x18c   : > { %1723 = vst [vmem:[%s3060_s7 + $0x30] sm:$0xff] %v2220_v62  ;;  %v1630_v23 = vadd.f32 %v1598_v44, %v1534_v29  ;;  %v1599_v1 = vmul.f32 %v1567_v54, %v1375_v58  ;;  %2235 = vtanh.f32 %v917_v61  ;;  %v3203_v14 = vpop.f32.mrb[38].mxu0  ;;  %v3205_v27 = vpop.f32.mrb[38].mxu1  ;;  %v728_v31 = vadd.f32 %v3120_v47, %v2967_v42 }
 0x18d   : > { %v2222_v32 = vpop.eup %2221  ;;  %v1503_v17 = vmul.f32 %v1471_v36, %v1247_v63  ;;  %v1120_v56 = vmul.f32 0.5, %v1088_v4  ;;  %v921_v24 = vadd.f32 %v3122_v21, %v2969_v43  ;;  %v3212_v13 = vpop.f32.mrb[39].mxu0  ;;  %v1026_v45 = vmul.f32 0.5, %v726_v22 }
 0x18e   : > { %1662 = vst [vmem:[%s3020_s14 + $0x48] sm:$0xff] %v1630_v23  ;;  %2237 = vtanh.f32 %v1630_v23  ;;  %v1344_v30 = vadd.f32 1.0, %v2222_v32  ;;  %v3214_v38 = vpop.f32.mrb[39].mxu1  ;;  %v1282_v20 = vmul.f32 0.5, %v919_v7  ;;  %v1154_v47 = vmul.f32 0.5, %v728_v31 }
 0x18f   : > { %v2224_v39 = vpop.eup %2223  ;;  %v1535_v44 = vadd.f32 %v1503_v17, %v1439_v2  ;;  %2239 = vtanh.f32 %v1153_v53  ;;  %v732_v51 = vadd.f32 %v3133_v6, %v2963_v40  ;;  %v925_v54 = vadd.f32 %v3135_v10, %v2965_v41 }
 0x190   : > { %v2226_v46 = vpop.eup %2225  ;;  %v1376_v48 = vmul.f32 0.5, %v1344_v30  ;;  %v1216_v49 = vadd.f32 1.0, %v2224_v39  ;;  %2241 = vtanh.f32 %v921_v24  ;;  %v734_v61 = vadd.f32 %v3139_v18, %v2967_v42  ;;  %v3226_v62 = vpop.f32.mrb[40].mxu0 }
 0x191   : > { %v2228_v50 = vpop.eup %2227  ;;  %1724 = vst [vmem:[%s3060_s7 + $0x38] sm:$0xff] %v2226_v46  ;;  %v1631_v21 = vadd.f32 %v1599_v1, %v1535_v44  ;;  %2243 = vtanh.f32 %v1026_v45  ;;  %v1027_v58 = vmul.f32 0.5, %v732_v51  ;;  %v1283_v36 = vmul.f32 0.5, %v925_v54  ;;  %v3228_v63 = vpop.f32.mrb[40].mxu1  ;;  %v1569_v44 = vld [vmem:[%s2820_s11 + $0x60] sm:$0xff] }
 0x192   : > { %v1600_v55 = vmul.f32 %v1568_v26, %v1376_v48  ;;  %v1248_v57 = vmul.f32 0.5, %v1216_v49  ;;  %v1440_v35 = vmul.f32 %v2228_v50, %v1120_v56  ;;  %2245 = vtanh.f32 %v1282_v20  ;;  %v2230_v29 = vpop.eup %2229  ;;  %v3232_v23 = vpop.f32.mrb[41].mxu0 }
 0x193   : > { %1663 = vst [vmem:[%s3020_s14 + $0x50] sm:$0xff] %v1631_v21  ;;  %2247 = vtanh.f32 %v1631_v21  ;;  %v1089_v10 = vadd.f32 1.0, %v2230_v29  ;;  %v927_v4 = vadd.f32 %v3141_v19, %v2969_v43  ;;  %v3234_v1 = vpop.f32.mrb[41].mxu1  ;;  %v1155_v18 = vmul.f32 0.5, %v734_v61  ;;  %v3241_v56 = vpop.f32.mrb[42].mxu0 }
 0x194   : > { %v2232_v6 = vpop.eup %2231  ;;  %v1504_v2 = vmul.f32 %v1472_v28, %v1248_v57  ;;  %2249 = vtanh.f32 %v1154_v47  ;;  %v736_v32 = vadd.f32 %v3144_v15, %v2963_v40  ;;  %v929_v17 = vadd.f32 %v3146_v16, %v2965_v41  ;;  %v3243_v22 = vpop.f32.mrb[42].mxu1  ;;  %v1473_v57 = vld [vmem:[%s2812_s28 + $0x60] sm:$0xff] }
 0x195   : > { %v2234_v53 = vpop.eup %2233  ;;  %1725 = vst [vmem:[%s3060_s7 + $0x40] sm:$0xff] %v2232_v6  ;;  %2251 = vtanh.f32 %v1027_v58  ;;  %v1121_v30 = vmul.f32 0.5, %v1089_v10  ;;  %v3245_v24 = vpop.f32.mrb[43].mxu0  ;;  %v738_v16 = vadd.f32 %v3148_v60, %v2967_v42  ;;  %v931_v50 = vadd.f32 %v3150_v33, %v2969_v43 }
 0x196   : > { %v2236_v19 = vpop.eup %2235  ;;  %v1536_v7 = vadd.f32 %v1504_v2, %v1440_v35  ;;  %v1345_v31 = vadd.f32 1.0, %v2234_v53  ;;  %2253 = vtanh.f32 %v1283_v36  ;;  %v3247_v39 = vpop.f32.mrb[43].mxu1  ;;  %v1028_v15 = vmul.f32 0.5, %v736_v32 }
 0x197   : > { %2255 = vtanh.f32 %v1155_v18  ;;  %v1284_v26 = vmul.f32 0.5, %v929_v17  ;;  %v1441_v48 = vmul.f32 %v2236_v19, %v1121_v30  ;;  %v1156_v47 = vmul.f32 0.5, %v738_v16  ;;  %v1570_v30 = vld [vmem:[%s2820_s11 + $0x68] sm:$0xff] }
 0x198   : > { %v2238_v45 = vpop.eup %2237  ;;  %v1632_v20 = vadd.f32 %v1600_v55, %v1536_v7  ;;  %v1377_v46 = vmul.f32 0.5, %v1345_v31  ;;  %2257 = vtanh.f32 %v927_v4  ;;  %v742_v21 = vadd.f32 %v3159_v3, %v2963_v40  ;;  %v3265_v58 = vpop.f32.mrb[44].mxu0 }
 0x199   : > { %v2240_v49 = vpop.eup %2239  ;;  %1726 = vst [vmem:[%s3060_s7 + $0x48] sm:$0xff] %v2238_v45  ;;  %2259 = vtanh.f32 %v1028_v15  ;;  %v935_v54 = vadd.f32 %v3161_v52, %v2965_v41  ;;  %v744_v29 = vadd.f32 %v3164_v11, %v2967_v42  ;;  %v937_v33 = vadd.f32 %v3166_v12, %v2969_v43  ;;  %v3267_v3 = vpop.f32.mrb[44].mxu1 }
 0x19a   : > { %v2242_v28 = vpop.eup %2241  ;;  %1664 = vst [vmem:[%s3020_s14 + $0x58] sm:$0xff] %v1632_v20  ;;  %2261 = vtanh.f32 %v1632_v20  ;;  %v1601_v60 = vmul.f32 %v1569_v44, %v1377_v46  ;;  %v1217_v51 = vadd.f32 1.0, %v2240_v49  ;;  %v1029_v35 = vmul.f32 0.5, %v742_v21  ;;  %v3269_v2 = vpop.f32.mrb[45].mxu0  ;;  %v1474_v49 = vld [vmem:[%s2812_s28 + $0x68] sm:$0xff] }
 0x19b   : > { %v2244_v55 = vpop.eup %2243  ;;  %2263 = vtanh.f32 %v1284_v26  ;;  %v1285_v52 = vmul.f32 0.5, %v935_v54  ;;  %v3271_v10 = vpop.f32.mrb[45].mxu1  ;;  %v1157_v53 = vmul.f32 0.5, %v744_v29  ;;  %v746_v12 = vadd.f32 %v3173_v25, %v2963_v40  ;;  %v1571_v29 = vld [vmem:[%s2820_s11 + $0x70] sm:$0xff] }
 0x19c   : > { %v2246_v36 = vpop.eup %2245  ;;  %v1249_v61 = vmul.f32 0.5, %v1217_v51  ;;  %v1090_v6 = vadd.f32 1.0, %v2244_v55  ;;  %2265 = vtanh.f32 %v1156_v47  ;;  %v3275_v18 = vpop.f32.mrb[46].mxu0  ;;  %v939_v31 = vadd.f32 %v3175_v59, %v2965_v41 }
 0x19d   : > { %v2248_v4 = vpop.eup %2247  ;;  %v1346_v11 = vadd.f32 1.0, %v2246_v36  ;;  %2267 = vtanh.f32 %v931_v50  ;;  %v3277_v32 = vpop.f32.mrb[46].mxu1  ;;  %v1030_v45 = vmul.f32 0.5, %v746_v12 }
 0x19e   : > { %v2250_v17 = vpop.eup %2249  ;;  %1727 = vst [vmem:[%s3060_s7 + $0x50] sm:$0xff] %v2248_v4  ;;  %v1505_v19 = vmul.f32 %v1473_v57, %v1249_v61  ;;  %v1122_v7 = vmul.f32 0.5, %v1090_v6  ;;  %2269 = vtanh.f32 %v1029_v35  ;;  %v3283_v44 = vpop.f32.mrb[47].mxu0  ;;  %v748_v4 = vadd.f32 %v3179_v34, %v2967_v42 }
 0x19f   : > { %v3285_v15 = vpop.f32.mrb[47].mxu1  ;;  %v2252_v26 = vpop.eup %2251  ;;  %v1378_v25 = vmul.f32 0.5, %v1346_v11  ;;  %v1218_v16 = vadd.f32 1.0, %v2250_v17  ;;  %2271 = vtanh.f32 %v1285_v52  ;;  %v1286_v52 = vmul.f32 0.5, %v939_v31 }
 0x1a0   : > { %v2254_v20 = vpop.eup %2253  ;;  %v1537_v46 = vadd.f32 %v1505_v19, %v1441_v48  ;;  %v1442_v47 = vmul.f32 %v2242_v28, %v1122_v7  ;;  %v1091_v50 = vadd.f32 1.0, %v2252_v26  ;;  %2273 = vtanh.f32 %v1157_v53  ;;  %v1475_v28 = vld [vmem:[%s2812_s28 + $0x70] sm:$0xff]  ;;  %v3292_v11 = vpop.f32.mrb[48].mxu0 }
 0x1a1   : > { %v2256_v21 = vpop.eup %2255  ;;  %v1602_v51 = vmul.f32 %v1570_v30, %v1378_v25  ;;  %v1250_v59 = vmul.f32 0.5, %v1218_v16  ;;  %v1347_v54 = vadd.f32 1.0, %v2254_v20  ;;  %2275 = vtanh.f32 %v937_v33  ;;  %v3294_v53 = vpop.f32.mrb[48].mxu1 }
 0x1a2   : > { %v2258_v55 = vpop.eup %2257  ;;  %v1633_v57 = vadd.f32 %v1601_v60, %v1537_v46  ;;  %v1123_v35 = vmul.f32 0.5, %v1091_v50  ;;  %v1219_v36 = vadd.f32 1.0, %v2256_v21  ;;  %2277 = vtanh.f32 %v1030_v45  ;;  %v3297_v19 = vpop.f32.mrb[49].mxu0 }
 0x1a3   : > { %v2260_v61 = vpop.eup %2259  ;;  %v1506_v6 = vmul.f32 %v1474_v49, %v1250_v59  ;;  %v1379_v48 = vmul.f32 0.5, %v1347_v54  ;;  %v3299_v7 = vpop.f32.mrb[49].mxu1  ;;  %v1158_v34 = vmul.f32 0.5, %v748_v4  ;;  %v941_v50 = vadd.f32 %v3181_v37, %v2969_v43 }
 0x1a4   : > { %v2262_v33 = vpop.eup %2261  ;;  %1665 = vst [vmem:[%s3020_s14 + $0x60] sm:$0xff] %v1633_v57  ;;  %2279 = vtanh.f32 %v1633_v57  ;;  %v1251_v60 = vmul.f32 0.5, %v1219_v36  ;;  %v1443_v12 = vmul.f32 %v2258_v55, %v1123_v35  ;;  %v1092_v17 = vadd.f32 1.0, %v2260_v61  ;;  %v3302_v25 = vpop.f32.mrb[50].mxu0  ;;  %v1572_v55 = vld [vmem:[%s2820_s11 + $0x78] sm:$0xff] }
 0x1a5   : > { %v2264_v30 = vpop.eup %2263  ;;  %1728 = vst [vmem:[%s3060_s7 + $0x58] sm:$0xff] %v2262_v33  ;;  %v1538_v31 = vadd.f32 %v1506_v6, %v1442_v47  ;;  %v1603_v26 = vmul.f32 %v1571_v29, %v1379_v48  ;;  %2281 = vtanh.f32 %v1286_v52  ;;  %v3304_v16 = vpop.f32.mrb[50].mxu1  ;;  %v752_v35 = vadd.f32 %v3190_v0, %v2963_v40  ;;  %v1476_v6 = vld [vmem:[%s2812_s28 + $0x78] sm:$0xff] }
 0x1a6   : > { %v2266_v45 = vpop.eup %2265  ;;  %v1507_v20 = vmul.f32 %v1475_v28, %v1251_v60  ;;  %v1124_v46 = vmul.f32 0.5, %v1092_v17  ;;  %v1348_v49 = vadd.f32 1.0, %v2264_v30  ;;  %v3308_v21 = vpop.f32.mrb[51].mxu0  ;;  %2283 = vtanh.f32 %v1158_v34  ;;  %v1573_v34 = vld [vmem:[%s2820_s11 + $0x80] sm:$0xff] }
 0x1a7   : > { %v3310_v59 = vpop.f32.mrb[51].mxu1  ;;  %v2268_v47 = vpop.eup %2267  ;;  %v1634_v54 = vadd.f32 %v1602_v51, %v1538_v31  ;;  %v1220_v57 = vadd.f32 1.0, %v2266_v45  ;;  %2285 = vtanh.f32 %v941_v50  ;;  %v1031_v51 = vmul.f32 0.5, %v752_v35  ;;  %v1477_v50 = vld [vmem:[%s2812_s28 + $0x80] sm:$0xff] }
 0x1a8   : > { %v2270_v29 = vpop.eup %2269  ;;  %v1539_v36 = vadd.f32 %v1507_v20, %v1443_v12  ;;  %v1380_v61 = vmul.f32 0.5, %v1348_v49  ;;  %v1444_v48 = vmul.f32 %v2268_v47, %v1124_v46  ;;  %v945_v0 = vadd.f32 %v3192_v5, %v2965_v41  ;;  %v3320_v20 = vpop.f32.mrb[52].mxu0 }
 0x1a9   : > { %v2272_v37 = vpop.eup %2271  ;;  %1666 = vst [vmem:[%s3020_s14 + $0x68] sm:$0xff] %v1634_v54  ;;  %2287 = vtanh.f32 %v1634_v54  ;;  %v1252_v28 = vmul.f32 0.5, %v1220_v57  ;;  %v1093_v52 = vadd.f32 1.0, %v2270_v29  ;;  %v3322_v46 = vpop.f32.mrb[52].mxu1  ;;  %v754_v54 = vadd.f32 %v3195_v8, %v2967_v42 }
 0x1aa   : > { %v2274_v4 = vpop.eup %2273  ;;  %v1635_v33 = vadd.f32 %v1603_v26, %v1539_v36  ;;  %v1604_v60 = vmul.f32 %v1572_v55, %v1380_v61  ;;  %v1349_v17 = vadd.f32 1.0, %v2272_v37  ;;  %2289 = vtanh.f32 %v1031_v51  ;;  %v3328_v5 = vpop.f32.mrb[53].mxu0 }
 0x1ab   : > { %v2276_v12 = vpop.eup %2275  ;;  %v1508_v30 = vmul.f32 %v1476_v6, %v1252_v28  ;;  %v1125_v31 = vmul.f32 0.5, %v1093_v52  ;;  %v1221_v45 = vadd.f32 1.0, %v2274_v4  ;;  %v1287_v47 = vmul.f32 0.5, %v945_v0  ;;  %v3330_v55 = vpop.f32.mrb[53].mxu1 }
 0x1ac   : > { %v2278_v49 = vpop.eup %2277  ;;  %1667 = vst [vmem:[%s3020_s14 + $0x70] sm:$0xff] %v1635_v33  ;;  %2291 = vtanh.f32 %v1635_v33  ;;  %v1381_v26 = vmul.f32 0.5, %v1349_v17  ;;  %v3332_v61 = vpop.f32.mrb[54].mxu0  ;;  %v1159_v52 = vmul.f32 0.5, %v754_v54  ;;  %v947_v8 = vadd.f32 %v3197_v9, %v2969_v43 }
 0x1ad   : > { %v1540_v57 = vadd.f32 %v1508_v30, %v1444_v48  ;;  %v1253_v35 = vmul.f32 0.5, %v1221_v45  ;;  %v1445_v29 = vmul.f32 %v2276_v12, %v1125_v31  ;;  %v1094_v36 = vadd.f32 1.0, %v2278_v49  ;;  %v3334_v6 = vpop.f32.mrb[54].mxu1  ;;  %v3338_v51 = vpop.f32.mrb[55].mxu0  ;;  %v1574_v49 = vld [vmem:[%s2820_s11 + $0x88] sm:$0xff] }
 0x1ae   : > { %v2280_v37 = vpop.eup %2279  ;;  %v1605_v28 = vmul.f32 %v1573_v34, %v1381_v26  ;;  %2293 = vtanh.f32 %v1287_v47  ;;  %v3340_v4 = vpop.f32.mrb[55].mxu1  ;;  %v756_v12 = vadd.f32 %v3203_v14, %v2963_v40  ;;  %v949_v31 = vadd.f32 %v3205_v27, %v2965_v41 }
 0x1af   : > { %v2282_v48 = vpop.eup %2281  ;;  %1729 = vst [vmem:[%s3060_s7 + $0x60] sm:$0xff] %v2280_v37  ;;  %v1636_v33 = vadd.f32 %v1604_v60, %v1540_v57  ;;  %v1509_v17 = vmul.f32 %v1477_v50, %v1253_v35  ;;  %v1126_v0 = vmul.f32 0.5, %v1094_v36  ;;  %2295 = vtanh.f32 %v1159_v52  ;;  %v1478_v35 = vld [vmem:[%s2812_s28 + $0x88] sm:$0xff] }
 0x1b0   : > { %v1350_v30 = vadd.f32 1.0, %v2282_v48  ;;  %v758_v9 = vadd.f32 %v3212_v13, %v2967_v42  ;;  %v2284_v34 = vpop.eup %2283  ;;  %v1032_v60 = vmul.f32 0.5, %v756_v12  ;;  %v951_v26 = vadd.f32 %v3214_v38, %v2969_v43  ;;  %v3354_v37 = vpop.f32.mrb[56].mxu0 }
 0x1b1   : > { %1668 = vst [vmem:[%s3020_s14 + $0x78] sm:$0xff] %v1636_v33  ;;  %2297 = vtanh.f32 %v1636_v33  ;;  %v1541_v45 = vadd.f32 %v1509_v17, %v1445_v29  ;;  %v2286_v14 = vpop.eup %2285  ;;  %v1222_v47 = vadd.f32 1.0, %v2284_v34  ;;  %v1288_v54 = vmul.f32 0.5, %v949_v31  ;;  %v3356_v29 = vpop.f32.mrb[56].mxu1 }
 0x1b2   : > { %v1382_v50 = vmul.f32 0.5, %v1350_v30  ;;  %2299 = vtanh.f32 %v947_v8  ;;  %v1446_v13 = vmul.f32 %v2286_v14, %v1126_v0  ;;  %v1160_v36 = vmul.f32 0.5, %v758_v9  ;;  %v3361_v8 = vpop.f32.mrb[57].mxu0  ;;  %v3363_v33 = vpop.f32.mrb[57].mxu1 }
 0x1b3   : > { %v2288_v27 = vpop.eup %2287  ;;  %v1637_v57 = vadd.f32 %v1605_v28, %v1541_v45  ;;  %2301 = vtanh.f32 %v1032_v60  ;;  %v1254_v48 = vmul.f32 0.5, %v1222_v47  ;;  %v762_v38 = vadd.f32 %v3226_v62, %v2963_v40  ;;  %v3372_v30 = vpop.f32.mrb[58].mxu0 }
 0x1b4   : > { %1730 = vst [vmem:[%s3060_s7 + $0x68] sm:$0xff] %v2288_v27  ;;  %v1606_v52 = vmul.f32 %v1574_v49, %v1382_v50  ;;  %2303 = vtanh.f32 %v1288_v54  ;;  %v2290_v28 = vpop.eup %2289  ;;  %v955_v17 = vadd.f32 %v3228_v63, %v2965_v41  ;;  %v764_v0 = vadd.f32 %v3232_v23, %v2967_v42  ;;  %v3374_v62 = vpop.f32.mrb[58].mxu1 }
 0x1b5   : > { %1669 = vst [vmem:[%s3020_s14 + $0x80] sm:$0xff] %v1637_v57  ;;  %2305 = vtanh.f32 %v1637_v57  ;;  %v957_v12 = vadd.f32 %v3234_v1, %v2969_v43  ;;  %v1510_v9 = vmul.f32 %v1478_v35, %v1254_v48  ;;  %v1095_v34 = vadd.f32 1.0, %v2290_v28  ;;  %v3376_v49 = vpop.f32.mrb[59].mxu0  ;;  %v3378_v60 = vpop.f32.mrb[59].mxu1  ;;  %v1575_v48 = vld [vmem:[%s2820_s11 + $0x90] sm:$0xff] }
 0x1b6   : > { %v2292_v31 = vpop.eup %2291  ;;  %2307 = vtanh.f32 %v1160_v36  ;;  %v1033_v45 = vmul.f32 0.5, %v762_v38  ;;  %v1289_v63 = vmul.f32 0.5, %v955_v17  ;;  %v1161_v23 = vmul.f32 0.5, %v764_v0 }
 0x1b7   : > { %1731 = vst [vmem:[%s3060_s7 + $0x70] sm:$0xff] %v2292_v31  ;;  %2309 = vtanh.f32 %v951_v26  ;;  %v766_v1 = vadd.f32 %v3241_v56, %v2963_v40  ;;  %v1542_v50 = vadd.f32 %v1510_v9, %v1446_v13  ;;  %v1127_v47 = vmul.f32 0.5, %v1095_v34 }
 0x1b8   : > { %v2294_v14 = vpop.eup %2293  ;;  %2311 = vtanh.f32 %v1033_v45  ;;  %v959_v54 = vadd.f32 %v3243_v22, %v2965_v41  ;;  %v768_v35 = vadd.f32 %v3245_v24, %v2967_v42  ;;  %v961_v13 = vadd.f32 %v3247_v39, %v2969_v43  ;;  %v3390_v0 = vpop.f32.mrb[60].mxu0 }
 0x1b9   : > { %v1351_v27 = vadd.f32 1.0, %v2294_v14  ;;  %2313 = vtanh.f32 %v1289_v63  ;;  %v1034_v57 = vmul.f32 0.5, %v766_v1  ;;  %v2296_v26 = vpop.eup %2295  ;;  %v1638_v36 = vadd.f32 %v1606_v52, %v1542_v50  ;;  %v3392_v31 = vpop.f32.mrb[60].mxu1  ;;  %v1479_v52 = vld [vmem:[%s2812_s28 + $0x90] sm:$0xff] }
 0x1ba   : > { %2315 = vtanh.f32 %v1161_v23  ;;  %v1290_v56 = vmul.f32 0.5, %v959_v54  ;;  %v1223_v22 = vadd.f32 1.0, %v2296_v26  ;;  %v1162_v17 = vmul.f32 0.5, %v768_v35  ;;  %v3405_v45 = vpop.f32.mrb[61].mxu1 }
 0x1bb   : > { %v2298_v38 = vpop.eup %2297  ;;  %v1383_v28 = vmul.f32 0.5, %v1351_v27  ;;  %2317 = vtanh.f32 %v957_v12  ;;  %1670 = vst [vmem:[%s3020_s14 + $0x88] sm:$0xff] %v1638_v36  ;;  %v772_v9 = vadd.f32 %v3265_v58, %v2963_v40  ;;  %v965_v39 = vadd.f32 %v3267_v3, %v2965_v41  ;;  %v3403_v12 = vpop.f32.mrb[61].mxu0 }
 0x1bc   : > { %v2300_v24 = vpop.eup %2299  ;;  %1732 = vst [vmem:[%s3060_s7 + $0x78] sm:$0xff] %v2298_v38  ;;  %2319 = vtanh.f32 %v1638_v36  ;;  %v774_v34 = vadd.f32 %v3269_v2, %v2967_v42  ;;  %v1255_v1 = vmul.f32 0.5, %v1223_v22  ;;  %v3407_v50 = vpop.f32.mrb[62].mxu0  ;;  %v1576_v22 = vld [vmem:[%s2820_s11 + $0x98] sm:$0xff] }
 0x1bd   : > { %v2302_v63 = vpop.eup %2301  ;;  %v1607_v23 = vmul.f32 %v1575_v48, %v1383_v28  ;;  %v1447_v14 = vmul.f32 %v2300_v24, %v1127_v47  ;;  %2321 = vtanh.f32 %v1034_v57  ;;  %v3409_v54 = vpop.f32.mrb[62].mxu1  ;;  %v1035_v27 = vmul.f32 0.5, %v772_v9 }
 0x1be   : > { %v2304_v58 = vpop.eup %2303  ;;  %v1096_v3 = vadd.f32 1.0, %v2302_v63  ;;  %2323 = vtanh.f32 %v1290_v56  ;;  %v1291_v2 = vmul.f32 0.5, %v965_v39  ;;  %v3411_v35 = vpop.f32.mrb[63].mxu0  ;;  %v1511_v48 = vmul.f32 %v1479_v52, %v1255_v1  ;;  %v1480_v1 = vld [vmem:[%s2812_s28 + $0x98] sm:$0xff] }
 0x1bf   : > { %v3413_v26 = vpop.f32.mrb[63].mxu1  ;;  %v2306_v36 = vpop.eup %2305  ;;  %v1352_v38 = vadd.f32 1.0, %v2304_v58  ;;  %2325 = vtanh.f32 %v1162_v17  ;;  %v1163_v47 = vmul.f32 0.5, %v774_v34  ;;  %v967_v56 = vadd.f32 %v3271_v10, %v2969_v43 }
 0x1c0   : > { %3658 = vst [vmem:[#allocation14_spill] sm:$0xff] %v3413_v26  ;;  %v2308_v57 = vpop.eup %2307  ;;  %1733 = vst [vmem:[%s3060_s7 + $0x80] sm:$0xff] %v2306_v36  ;;  %v1128_v28 = vmul.f32 0.5, %v1096_v3  ;;  %2327 = vtanh.f32 %v961_v13  ;;  %v776_v24 = vadd.f32 %v3275_v18, %v2963_v40  ;;  %v1543_v39 = vadd.f32 %v1511_v48, %v1447_v14 }
 0x1c1   : > { %v2310_v9 = vpop.eup %2309  ;;  %v1384_v63 = vmul.f32 0.5, %v1352_v38  ;;  %v1224_v26 = vadd.f32 1.0, %v2308_v57  ;;  %2329 = vtanh.f32 %v1035_v27  ;;  %v969_v13 = vadd.f32 %v3277_v32, %v2965_v41 }
 0x1c2   : > { %v2312_v52 = vpop.eup %2311  ;;  %v1448_v17 = vmul.f32 %v2310_v9, %v1128_v28  ;;  %2331 = vtanh.f32 %v1291_v2  ;;  %v1036_v34 = vmul.f32 0.5, %v776_v24  ;;  %v1639_v10 = vadd.f32 %v1607_v23, %v1543_v39  ;;  %v1577_v28 = vld [vmem:[%s2820_s11 + $0xa0] sm:$0xff] }
 0x1c3   : > { %v2314_v58 = vpop.eup %2313  ;;  %v1608_v3 = vmul.f32 %v1576_v22, %v1384_v63  ;;  %v1256_v36 = vmul.f32 0.5, %v1224_v26  ;;  %v1097_v18 = vadd.f32 1.0, %v2312_v52  ;;  %2333 = vtanh.f32 %v1163_v47  ;;  %v1481_v26 = vld [vmem:[%s2812_s28 + $0xa0] sm:$0xff] }
 0x1c4   : > { %v2316_v14 = vpop.eup %2315  ;;  %v1353_v48 = vadd.f32 1.0, %v2314_v58  ;;  %v1292_v27 = vmul.f32 0.5, %v969_v13  ;;  %v778_v38 = vadd.f32 %v3283_v44, %v2967_v42  ;;  %1671 = vst [vmem:[%s3020_s14 + $0x90] sm:$0xff] %v1639_v10  ;;  %2335 = vtanh.f32 %v1639_v10 }
 0x1c5   : > { %v2318_v2 = vpop.eup %2317  ;;  %v1512_v57 = vmul.f32 %v1480_v1, %v1256_v36  ;;  %v1129_v32 = vmul.f32 0.5, %v1097_v18  ;;  %v1225_v24 = vadd.f32 1.0, %v2316_v14  ;;  %2337 = vtanh.f32 %v967_v56 }
 0x1c6   : > { %v2320_v23 = vpop.eup %2319  ;;  %v1385_v22 = vmul.f32 0.5, %v1353_v48  ;;  %v1164_v9 = vmul.f32 0.5, %v778_v38  ;;  %v971_v47 = vadd.f32 %v3285_v15, %v2969_v43  ;;  %2339 = vtanh.f32 %v1036_v34  ;;  %v1578_v48 = vld [vmem:[%s2820_s11 + $0xa8] sm:$0xff] }
 0x1c7   : > { %v2322_v39 = vpop.eup %2321  ;;  %1734 = vst [vmem:[%s3060_s7 + $0x88] sm:$0xff] %v2320_v23  ;;  %v1544_v63 = vadd.f32 %v1512_v57, %v1448_v17  ;;  %v1257_v44 = vmul.f32 0.5, %v1225_v24  ;;  %v1449_v52 = vmul.f32 %v2318_v2, %v1129_v32  ;;  %2341 = vtanh.f32 %v1292_v27  ;;  %v1482_v32 = vld [vmem:[%s2812_s28 + $0xa8] sm:$0xff] }
 0x1c8   : > { %v2324_v13 = vpop.eup %2323  ;;  %v1609_v1 = vmul.f32 %v1577_v28, %v1385_v22  ;;  %v1098_v58 = vadd.f32 1.0, %v2322_v39  ;;  %v782_v10 = vadd.f32 %v3292_v11, %v2963_v40  ;;  %2343 = vtanh.f32 %v1164_v9 }
 0x1c9   : > { %v2326_v56 = vpop.eup %2325  ;;  %v1640_v36 = vadd.f32 %v1608_v3, %v1544_v63  ;;  %v1513_v18 = vmul.f32 %v1481_v26, %v1257_v44  ;;  %v1354_v15 = vadd.f32 1.0, %v2324_v13  ;;  %2345 = vtanh.f32 %v971_v47 }
 0x1ca   : > { %v2328_v14 = vpop.eup %2327  ;;  %v1130_v17 = vmul.f32 0.5, %v1098_v58  ;;  %v1226_v38 = vadd.f32 1.0, %v2326_v56  ;;  %v1037_v34 = vmul.f32 0.5, %v782_v10  ;;  %v975_v11 = vadd.f32 %v3294_v53, %v2965_v41 }
 0x1cb   : > { %v2330_v2 = vpop.eup %2329  ;;  %1672 = vst [vmem:[%s3020_s14 + $0x98] sm:$0xff] %v1640_v36  ;;  %2347 = vtanh.f32 %v1640_v36  ;;  %v1545_v57 = vadd.f32 %v1513_v18, %v1449_v52  ;;  %v1386_v27 = vmul.f32 0.5, %v1354_v15  ;;  %v1579_v52 = vld [vmem:[%s2820_s11 + $0xb0] sm:$0xff]  ;;  %v784_v13 = vadd.f32 %v3297_v19, %v2967_v42 }
 0x1cc   : > { %v2332_v3 = vpop.eup %2331  ;;  %v1258_v28 = vmul.f32 0.5, %v1226_v38  ;;  %v1450_v24 = vmul.f32 %v2328_v14, %v1130_v17  ;;  %v1099_v23 = vadd.f32 1.0, %v2330_v2  ;;  %2349 = vtanh.f32 %v1037_v34  ;;  %v1483_v15 = vld [vmem:[%s2812_s28 + $0xb0] sm:$0xff] }
 0x1cd   : > { %v1641_v22 = vadd.f32 %v1609_v1, %v1545_v57  ;;  %v1610_v26 = vmul.f32 %v1578_v48, %v1386_v27  ;;  %v1355_v9 = vadd.f32 1.0, %v2332_v3  ;;  %v1293_v47 = vmul.f32 0.5, %v975_v11  ;;  %v2334_v39 = vpop.eup %2333 }
 0x1ce   : > { %v1514_v63 = vmul.f32 %v1482_v32, %v1258_v28  ;;  %v1131_v44 = vmul.f32 0.5, %v1099_v23  ;;  %v977_v53 = vadd.f32 %v3299_v7, %v2969_v43  ;;  %v2336_v58 = vpop.eup %2335  ;;  %v1227_v1 = vadd.f32 1.0, %v2334_v39  ;;  %v1580_v23 = vld [vmem:[%s2820_s11 + $0xb8] sm:$0xff] }
 0x1cf   : > { %1673 = vst [vmem:[%s3020_s14 + $0xa0] sm:$0xff] %v1641_v22  ;;  %2351 = vtanh.f32 %v1641_v22  ;;  %v1387_v10 = vmul.f32 0.5, %v1355_v9  ;;  %v786_v56 = vadd.f32 %v3302_v25, %v2963_v40  ;;  %v2338_v36 = vpop.eup %2337  ;;  %1735 = vst [vmem:[%s3060_s7 + $0x90] sm:$0xff] %v2336_v58  ;;  %v1165_v14 = vmul.f32 0.5, %v784_v13 }
 0x1d0   : > { %v1546_v18 = vadd.f32 %v1514_v63, %v1450_v24  ;;  %2353 = vtanh.f32 %v1293_v47  ;;  %v979_v19 = vadd.f32 %v3304_v16, %v2965_v41  ;;  %v2340_v17 = vpop.eup %2339  ;;  %v1259_v48 = vmul.f32 0.5, %v1227_v1  ;;  %v1484_v63 = vld [vmem:[%s2812_s28 + $0xb8] sm:$0xff] }
 0x1d1   : > { %v1611_v7 = vmul.f32 %v1579_v52, %v1387_v10  ;;  %v1451_v38 = vmul.f32 %v2338_v36, %v1131_v44  ;;  %2355 = vtanh.f32 %v977_v53  ;;  %v2342_v34 = vpop.eup %2341  ;;  %v1100_v57 = vadd.f32 1.0, %v2340_v17 }
 0x1d2   : > { %v1642_v2 = vadd.f32 %v1610_v26, %v1546_v18  ;;  %2357 = vtanh.f32 %v1165_v14  ;;  %v1038_v25 = vmul.f32 0.5, %v786_v56  ;;  %v2344_v27 = vpop.eup %2343  ;;  %v1515_v32 = vmul.f32 %v1483_v15, %v1259_v48 }
 0x1d3   : > { %v1356_v11 = vadd.f32 1.0, %v2342_v34  ;;  %v1294_v3 = vmul.f32 0.5, %v979_v19  ;;  %v788_v16 = vadd.f32 %v3308_v21, %v2967_v42  ;;  %v2346_v28 = vpop.eup %2345  ;;  %v1132_v24 = vmul.f32 0.5, %v1100_v57 }
 0x1d4   : > { %1674 = vst [vmem:[%s3020_s14 + $0xa8] sm:$0xff] %v1642_v2  ;;  %2359 = vtanh.f32 %v1642_v2  ;;  %v1228_v22 = vadd.f32 1.0, %v2344_v27  ;;  %v981_v26 = vadd.f32 %v3310_v59, %v2969_v43  ;;  %v1547_v47 = vadd.f32 %v1515_v32, %v1451_v38 }
 0x1d5   : > { %v2348_v9 = vpop.eup %2347  ;;  %v1388_v39 = vmul.f32 0.5, %v1356_v11  ;;  %2361 = vtanh.f32 %v1038_v25  ;;  %v1166_v44 = vmul.f32 0.5, %v788_v16  ;;  %v1452_v21 = vmul.f32 %v2346_v28, %v1132_v24  ;;  %v1485_v16 = vld [vmem:[%s2812_s28 + $0xc0] sm:$0xff] }
 0x1d6   : > { %v2350_v52 = vpop.eup %2349  ;;  %1736 = vst [vmem:[%s3060_s7 + $0x98] sm:$0xff] %v2348_v9  ;;  %v1260_v13 = vmul.f32 0.5, %v1228_v22  ;;  %2363 = vtanh.f32 %v1294_v3  ;;  %v792_v53 = vadd.f32 %v3320_v20, %v2963_v40  ;;  %v1643_v58 = vadd.f32 %v1611_v7, %v1547_v47 }
 0x1d7   : > { %v1612_v10 = vmul.f32 %v1580_v23, %v1388_v39  ;;  %v1101_v1 = vadd.f32 1.0, %v2350_v52  ;;  %2365 = vtanh.f32 %v1166_v44  ;;  %v985_v36 = vadd.f32 %v3322_v46, %v2965_v41 }
 0x1d8   : > { %v1516_v59 = vmul.f32 %v1484_v63, %v1260_v13  ;;  %2367 = vtanh.f32 %v981_v26  ;;  %v1039_v56 = vmul.f32 0.5, %v792_v53  ;;  %1675 = vst [vmem:[%s3020_s14 + $0xb0] sm:$0xff] %v1643_v58  ;;  %v794_v14 = vadd.f32 %v3328_v5, %v2967_v42  ;;  %v1582_v53 = vld [vmem:[%s2820_s11 + $0xc8] sm:$0xff] }
 0x1d9   : > { %v2352_v18 = vpop.eup %2351  ;;  %2369 = vtanh.f32 %v1643_v58  ;;  %v1133_v15 = vmul.f32 0.5, %v1101_v1  ;;  %v987_v20 = vadd.f32 %v3330_v55, %v2969_v43  ;;  %v1295_v7 = vmul.f32 0.5, %v985_v36  ;;  %v1581_v55 = vld [vmem:[%s2820_s11 + $0xc0] sm:$0xff] }
 0x1da   : > { %v2354_v19 = vpop.eup %2353  ;;  %1737 = vst [vmem:[%s3060_s7 + $0xa0] sm:$0xff] %v2352_v18  ;;  %v1548_v17 = vadd.f32 %v1516_v59, %v1452_v21  ;;  %2371 = vtanh.f32 %v1039_v56  ;;  %v796_v48 = vadd.f32 %v3332_v61, %v2963_v40  ;;  %v1167_v34 = vmul.f32 0.5, %v794_v14  ;;  %v1486_v56 = vld [vmem:[%s2812_s28 + $0xc8] sm:$0xff] }
 0x1db   : > { %v2356_v46 = vpop.eup %2355  ;;  %v1357_v38 = vadd.f32 1.0, %v2354_v19  ;;  %2373 = vtanh.f32 %v987_v20  ;;  %v989_v5 = vadd.f32 %v3334_v6, %v2965_v41  ;;  %v798_v28 = vadd.f32 %v3338_v51, %v2967_v42 }
 0x1dc   : > { %v2358_v2 = vpop.eup %2357  ;;  %v1644_v57 = vadd.f32 %v1612_v10, %v1548_v17  ;;  %v1453_v25 = vmul.f32 %v2356_v46, %v1133_v15  ;;  %2375 = vtanh.f32 %v1295_v7  ;;  %v1040_v27 = vmul.f32 0.5, %v796_v48 }
 0x1dd   : > { %v1389_v32 = vmul.f32 0.5, %v1357_v38  ;;  %v1229_v11 = vadd.f32 1.0, %v2358_v2  ;;  %2377 = vtanh.f32 %v1167_v34  ;;  %v1296_v61 = vmul.f32 0.5, %v989_v5 }
 0x1de   : > { %v2360_v3 = vpop.eup %2359  ;;  %1676 = vst [vmem:[%s3020_s14 + $0xb8] sm:$0xff] %v1644_v57  ;;  %2379 = vtanh.f32 %v1644_v57  ;;  %v991_v6 = vadd.f32 %v3340_v4, %v2969_v43  ;;  %v802_v24 = vadd.f32 %v3354_v37, %v2963_v40  ;;  %v995_v9 = vadd.f32 %v3356_v29, %v2965_v41 }
 0x1df   : > { %v2362_v23 = vpop.eup %2361  ;;  %1738 = vst [vmem:[%s3060_s7 + $0xa8] sm:$0xff] %v2360_v3  ;;  %v1613_v22 = vmul.f32 %v1581_v55, %v1389_v32  ;;  %v1261_v26 = vmul.f32 0.5, %v1229_v11  ;;  %2381 = vtanh.f32 %v1040_v27  ;;  %v1168_v63 = vmul.f32 0.5, %v798_v28  ;;  %v1583_v27 = vld [vmem:[%s2820_s11 + $0xd0] sm:$0xff] }
 0x1e0   : > { %v2364_v47 = vpop.eup %2363  ;;  %v1102_v39 = vadd.f32 1.0, %v2362_v23  ;;  %2383 = vtanh.f32 %v1296_v61  ;;  %v1041_v51 = vmul.f32 0.5, %v802_v24  ;;  %v1297_v37 = vmul.f32 0.5, %v995_v9 }
 0x1e1   : > { %v2366_v44 = vpop.eup %2365  ;;  %v1517_v4 = vmul.f32 %v1485_v16, %v1261_v26  ;;  %v1358_v52 = vadd.f32 1.0, %v2364_v47  ;;  %2385 = vtanh.f32 %v991_v6  ;;  %v804_v29 = vadd.f32 %v3361_v8, %v2967_v42 }
 0x1e2   : > { %v2368_v13 = vpop.eup %2367  ;;  %v1134_v21 = vmul.f32 0.5, %v1102_v39  ;;  %v1230_v58 = vadd.f32 1.0, %v2366_v44  ;;  %2387 = vtanh.f32 %v1168_v63  ;;  %v997_v36 = vadd.f32 %v3363_v33, %v2969_v43 }
 0x1e3   : > { %v2370_v10 = vpop.eup %2369  ;;  %v1549_v1 = vadd.f32 %v1517_v4, %v1453_v25  ;;  %v1390_v59 = vmul.f32 0.5, %v1358_v52  ;;  %2389 = vtanh.f32 %v1041_v51  ;;  %v1169_v20 = vmul.f32 0.5, %v804_v29  ;;  %v1488_v29 = vld [vmem:[%s2812_s28 + $0xd8] sm:$0xff] }
 0x1e4   : > { %v2372_v18 = vpop.eup %2371  ;;  %1739 = vst [vmem:[%s3060_s7 + $0xb0] sm:$0xff] %v2370_v10  ;;  %v1262_v15 = vmul.f32 0.5, %v1230_v58  ;;  %v1454_v14 = vmul.f32 %v2368_v13, %v1134_v21  ;;  %2391 = vtanh.f32 %v1297_v37  ;;  %v806_v33 = vadd.f32 %v3372_v30, %v2963_v40 }
 0x1e5   : > { %v2374_v19 = vpop.eup %2373  ;;  %v1645_v17 = vadd.f32 %v1613_v22, %v1549_v1  ;;  %v1614_v7 = vmul.f32 %v1582_v53, %v1390_v59  ;;  %v1103_v8 = vadd.f32 1.0, %v2372_v18  ;;  %2393 = vtanh.f32 %v997_v36 }
 0x1e6   : > { %v2376_v48 = vpop.eup %2375  ;;  %v1518_v46 = vmul.f32 %v1486_v56, %v1262_v15  ;;  %2395 = vtanh.f32 %v1169_v20  ;;  %v999_v38 = vadd.f32 %v3374_v62, %v2965_v41  ;;  %v808_v57 = vadd.f32 %v3376_v49, %v2967_v42  ;;  %v1487_v62 = vld [vmem:[%s2812_s28 + $0xd0] sm:$0xff] }
 0x1e7   : > { %v2378_v34 = vpop.eup %2377  ;;  %1677 = vst [vmem:[%s3020_s14 + $0xc0] sm:$0xff] %v1645_v17  ;;  %2397 = vtanh.f32 %v1645_v17  ;;  %v1135_v5 = vmul.f32 0.5, %v1103_v8  ;;  %v1359_v2 = vadd.f32 1.0, %v2376_v48  ;;  %v1042_v11 = vmul.f32 0.5, %v806_v33  ;;  %v1489_v33 = vld [vmem:[%s2812_s28 + $0xe0] sm:$0xff] }
 0x1e8   : > { %v2380_v55 = vpop.eup %2379  ;;  %v1550_v25 = vadd.f32 %v1518_v46, %v1454_v14  ;;  %v1231_v32 = vadd.f32 1.0, %v2378_v34  ;;  %v1298_v61 = vmul.f32 0.5, %v999_v38  ;;  %v1170_v28 = vmul.f32 0.5, %v808_v57  ;;  %v1585_v14 = vld [vmem:[%s2820_s11 + $0xe0] sm:$0xff] }
 0x1e9   : > { %v2382_v3 = vpop.eup %2381  ;;  %1740 = vst [vmem:[%s3060_s7 + $0xb8] sm:$0xff] %v2380_v55  ;;  %v1391_v30 = vmul.f32 0.5, %v1359_v2  ;;  %v1455_v16 = vmul.f32 %v2374_v19, %v1135_v5  ;;  %v1001_v6 = vadd.f32 %v3378_v60, %v2969_v43  ;;  %2399 = vtanh.f32 %v1042_v11  ;;  %v1584_v60 = vld [vmem:[%s2820_s11 + $0xd8] sm:$0xff] }
 0x1ea   : > { %v2384_v24 = vpop.eup %2383  ;;  %v1646_v23 = vadd.f32 %v1614_v7, %v1550_v25  ;;  %v1263_v49 = vmul.f32 0.5, %v1231_v32  ;;  %v1104_v22 = vadd.f32 1.0, %v2382_v3  ;;  %2401 = vtanh.f32 %v1298_v61 }
 0x1eb   : > { %v2386_v26 = vpop.eup %2385  ;;  %v1615_v9 = vmul.f32 %v1583_v27, %v1391_v30  ;;  %v1360_v47 = vadd.f32 1.0, %v2384_v24  ;;  %v812_v39 = vadd.f32 %v3390_v0, %v2963_v40  ;;  %v1005_v4 = vadd.f32 %v3392_v31, %v2965_v41 }
 0x1ec   : > { %v2388_v63 = vpop.eup %2387  ;;  %1678 = vst [vmem:[%s3020_s14 + $0xc8] sm:$0xff] %v1646_v23  ;;  %2403 = vtanh.f32 %v1646_v23  ;;  %v1519_v51 = vmul.f32 %v1487_v62, %v1263_v49  ;;  %v1136_v44 = vmul.f32 0.5, %v1104_v22  ;;  %v814_v19 = vadd.f32 %v3403_v12, %v2967_v42  ;;  %v1490_v49 = vld [vmem:[%s2812_s28 + $0xe8] sm:$0xff] }
 0x1ed   : > { %v2390_v52 = vpop.eup %2389  ;;  %v1392_v37 = vmul.f32 0.5, %v1360_v47  ;;  %v1232_v13 = vadd.f32 1.0, %v2388_v63  ;;  %2405 = vtanh.f32 %v1170_v28  ;;  %v1043_v21 = vmul.f32 0.5, %v812_v39  ;;  %v1586_v39 = vld [vmem:[%s2820_s11 + $0xe8] sm:$0xff] }
 0x1ee   : > { %v2392_v53 = vpop.eup %2391  ;;  %v1551_v58 = vadd.f32 %v1519_v51, %v1455_v16  ;;  %v1456_v10 = vmul.f32 %v2386_v26, %v1136_v44  ;;  %v1105_v0 = vadd.f32 1.0, %v2390_v52  ;;  %2407 = vtanh.f32 %v1001_v6 }
 0x1ef   : > { %v2394_v1 = vpop.eup %2393  ;;  %v1616_v59 = vmul.f32 %v1584_v60, %v1392_v37  ;;  %v1264_v56 = vmul.f32 0.5, %v1232_v13  ;;  %v1361_v36 = vadd.f32 1.0, %v2392_v53  ;;  %2409 = vtanh.f32 %v1043_v21 }
 0x1f0   : > { %v2396_v31 = vpop.eup %2395  ;;  %v1647_v18 = vadd.f32 %v1615_v9, %v1551_v58  ;;  %v1137_v15 = vmul.f32 0.5, %v1105_v0  ;;  %v1299_v20 = vmul.f32 0.5, %v1005_v4  ;;  %v1007_v46 = vadd.f32 %v3405_v45, %v2969_v43  ;;  %v1491_v0 = vld [vmem:[%s2812_s28 + $0xf0] sm:$0xff] }
 0x1f1   : > { %v2398_v17 = vpop.eup %2397  ;;  %v1520_v7 = vmul.f32 %v1488_v29, %v1264_v56  ;;  %v1393_v8 = vmul.f32 0.5, %v1361_v36  ;;  %v1233_v48 = vadd.f32 1.0, %v2396_v31  ;;  %v1171_v34 = vmul.f32 0.5, %v814_v19 }
 0x1f2   : > { %1741 = vst [vmem:[%s3060_s7 + $0xc0] sm:$0xff] %v2398_v17  ;;  %1679 = vst [vmem:[%s3020_s14 + $0xd0] sm:$0xff] %v1647_v18  ;;  %2411 = vtanh.f32 %v1647_v18  ;;  %v1457_v38 = vmul.f32 %v2394_v1, %v1137_v15  ;;  %v816_v5 = vadd.f32 %v3407_v50, %v2963_v40  ;;  %v1009_v45 = vadd.f32 %v3409_v54, %v2965_v41 }
 0x1f3   : > { %v1552_v2 = vadd.f32 %v1520_v7, %v1456_v10  ;;  %v1617_v57 = vmul.f32 %v1585_v14, %v1393_v8  ;;  %v1265_v55 = vmul.f32 0.5, %v1233_v48  ;;  %2413 = vtanh.f32 %v1299_v20  ;;  %v2400_v12 = vpop.eup %2399  ;;  %v1587_v10 = vld [vmem:[%s2820_s11 + $0xf0] sm:$0xff] }
 0x1f4   : > { %2415 = vtanh.f32 %v1171_v34  ;;  %v1044_v25 = vmul.f32 0.5, %v816_v5  ;;  %v818_v27 = vadd.f32 %v3411_v35, %v2967_v42  ;;  %v2402_v32 = vpop.eup %2401  ;;  %v1106_v3 = vadd.f32 1.0, %v2400_v12  ;;  %v3659_v42 = vld [vmem:[#allocation14_spill] sm:$0xff] }
 0x1f5   : > { %v1648_v11 = vadd.f32 %v1616_v59, %v1552_v2  ;;  %v1521_v61 = vmul.f32 %v1489_v33, %v1265_v55  ;;  %2417 = vtanh.f32 %v1007_v46  ;;  %v1362_v50 = vadd.f32 1.0, %v2402_v32  ;;  %v1492_v46 = vld [vmem:[%s2812_s28 + $0xf8] sm:$0xff] }
 0x1f6   : > { %v2404_v40 = vpop.eup %2403  ;;  %2419 = vtanh.f32 %v1044_v25  ;;  %v1300_v30 = vmul.f32 0.5, %v1009_v45  ;;  %v1172_v62 = vmul.f32 0.5, %v818_v27  ;;  %v1138_v54 = vmul.f32 0.5, %v1106_v3  ;;  %v1588_v2 = vld [vmem:[%s2820_s11 + $0xf8] sm:$0xff]  ;;  %s1750_s11 = scalar_lea.sflag [#allocation4], %s2805_s17 }
 0x1f7   : > { %v2406_v16 = vpop.eup %2405  ;;  %1742 = vst [vmem:[%s3060_s7 + $0xc8] sm:$0xff] %v2404_v40  ;;  %1680 = vst [vmem:[%s3020_s14 + $0xd8] sm:$0xff] %v1648_v11  ;;  %2421 = vtanh.f32 %v1648_v11  ;;  %v1553_v41 = vadd.f32 %v1521_v61, %v1457_v38  ;;  %v1011_v35 = vadd.f32 %v3659_v42, %v2969_v43  ;;  %v1394_v26 = vmul.f32 0.5, %v1362_v50 }
 0x1f8   : > { %v2408_v28 = vpop.eup %2407  ;;  %v1234_v6 = vadd.f32 1.0, %v2406_v16  ;;  %2423 = vtanh.f32 %v1300_v30 }
 0x1f9   : > { %v2410_v24 = vpop.eup %2409  ;;  %v1649_v23 = vadd.f32 %v1617_v57, %v1553_v41  ;;  %v1458_v22 = vmul.f32 %v2408_v28, %v1138_v54  ;;  %2425 = vtanh.f32 %v1172_v62  ;;  %v1618_v4 = vmul.f32 %v1586_v39, %v1394_v26 }
 0x1fa   : > { %v1266_v9 = vmul.f32 0.5, %v1234_v6  ;;  %v1107_v47 = vadd.f32 1.0, %v2410_v24  ;;  %2427 = vtanh.f32 %v1011_v35 }
 0x1fb   : > { %1681 = vst [vmem:[%s3020_s14 + $0xe0] sm:$0xff] %v1649_v23  ;;  %2429 = vtanh.f32 %v1649_v23 }
 0x1fc   : > { %v2412_v63 = vpop.eup %2411  ;;  %v1522_v43 = vmul.f32 %v1490_v49, %v1266_v9  ;;  %v1139_v51 = vmul.f32 0.5, %v1107_v47 }
 0x1fd   : > { %v2414_v44 = vpop.eup %2413  ;;  %1743 = vst [vmem:[%s3060_s7 + $0xd0] sm:$0xff] %v2412_v63 }
 0x1fe   : > { %v2416_v60 = vpop.eup %2415  ;;  %v1554_v52 = vadd.f32 %v1522_v43, %v1458_v22  ;;  %v1363_v37 = vadd.f32 1.0, %v2414_v44 }
 0x1ff   : > { %v2418_v13 = vpop.eup %2417  ;;  %v1235_v21 = vadd.f32 1.0, %v2416_v60 }
 0x200   : > { %v2420_v53 = vpop.eup %2419  ;;  %v1650_v58 = vadd.f32 %v1618_v4, %v1554_v52  ;;  %v1395_v29 = vmul.f32 0.5, %v1363_v37  ;;  %v1459_v1 = vmul.f32 %v2418_v13, %v1139_v51 }
 0x201   : > { %v2422_v59 = vpop.eup %2421  ;;  %v1267_v56 = vmul.f32 0.5, %v1235_v21  ;;  %v1108_v36 = vadd.f32 1.0, %v2420_v53 }
 0x202   : > { %v2424_v31 = vpop.eup %2423  ;;  %1744 = vst [vmem:[%s3060_s7 + $0xd8] sm:$0xff] %v2422_v59  ;;  %1682 = vst [vmem:[%s3020_s14 + $0xe8] sm:$0xff] %v1650_v58  ;;  %2431 = vtanh.f32 %v1650_v58  ;;  %v1619_v15 = vmul.f32 %v1587_v10, %v1395_v29 }
 0x203   : > { %v2426_v18 = vpop.eup %2425  ;;  %v1523_v14 = vmul.f32 %v1491_v0, %v1267_v56  ;;  %v1140_v20 = vmul.f32 0.5, %v1108_v36  ;;  %v1364_v19 = vadd.f32 1.0, %v2424_v31 }
 0x204   : > { %v2428_v17 = vpop.eup %2427  ;;  %v1236_v7 = vadd.f32 1.0, %v2426_v18 }
 0x205   : > { %v2430_v8 = vpop.eup %2429  ;;  %v1555_v48 = vadd.f32 %v1523_v14, %v1459_v1  ;;  %v1460_v33 = vmul.f32 %v2428_v17, %v1140_v20  ;;  %v1396_v38 = vmul.f32 0.5, %v1364_v19 }
 0x206   : > { %1745 = vst [vmem:[%s3060_s7 + $0xe0] sm:$0xff] %v2430_v8  ;;  %v1268_v34 = vmul.f32 0.5, %v1236_v7 }
 0x207   : > { %v1651_v5 = vadd.f32 %v1619_v15, %v1555_v48  ;;  %v1620_v55 = vmul.f32 %v1588_v2, %v1396_v38 }
 0x208   : > { %v1524_v57 = vmul.f32 %v1492_v46, %v1268_v34 }
 0x209   : > { %1683 = vst [vmem:[%s3020_s14 + $0xf0] sm:$0xff] %v1651_v5  ;;  %2433 = vtanh.f32 %v1651_v5 }
 0x20a   : > { %v1556_v12 = vadd.f32 %v1524_v57, %v1460_v33 }
 0x20c   : > { %v2432_v25 = vpop.eup %2431  ;;  %v1652_v45 = vadd.f32 %v1620_v55, %v1556_v12 }
 0x20d   : > { %1746 = vst [vmem:[%s3060_s7 + $0xe8] sm:$0xff] %v2432_v25 }
 0x20e   : > { %1684 = vst [vmem:[%s3020_s14 + $0xf8] sm:$0xff] %v1652_v45  ;;  %2435 = vtanh.f32 %v1652_v45 }
 0x20f   : > { %2510 = shalt.err (!%p2507_p3)
}
 0x210   : > { %s2511_s16 = scalar_lea.hbm %s3548_s18, 4096  ;;  %s2515_s14 = scalar_lea.hbm %s3643_s5, 8192 }
 0x211   : > { %p2512_p8 = scmp.ne.s32.totalorder %s3548_s18, %s2511_s16  ;;  %p2516_p4 = scmp.lt.u32.totalorder %s3548_s18, %s3643_s5 }
 0x212   : > { %p2517_p6 = scmp.lt.u32.totalorder %s2515_s14, %s2511_s16  ;;  %p2519_p1 = scmp.lt.u32.totalorder %s2511_s16, %s3548_s18 }
 0x213   : > { %p2513_p0 = pnand %p2512_p8, %p3660_p12 }
 0x214   : > { %p2518_p13 = por %p2517_p6, %p2516_p4 }
 0x215   : > { %p2514_p2 = pneg %p2513_p0 }
 0x216   : > { %p2520_p10 = por %p2519_p1, %p2518_p13 }
 0x218   : > { %p2521_p5 = pnand %p2520_p10, %p2514_p2 }
 0x21a   : > { %2524 = shalt.err (!%p2521_p5)
}
 0x21b   : > { %s2607_s19 = smov 128   ;;  %s2608_s1 = smov 8   ;;  %v2434_v27 = vpop.eup %2433 }
 0x21c   : > { %2020 = dma.vmem_to_hbm [thread:$0]  (%p3660_p12), %s3550_s8, 4096, %s3548_s18, %s1750_s11, %s2607_s19, %s2607_s19, %s2608_s1   ;;  %v2436_v32 = vpop.eup %2435 }
 0x21d   : > { %1747 = vst [vmem:[%s3060_s7 + $0xf0] sm:$0xff] %v2434_v27  ;;  %s1784_s15 = sshll.u32 %s3060_s7, 4  ;;  %s3588_s26 = scalar_lea.hbm %s3644_s6, %s2014_s12  ;;  %1748 = vst [vmem:[%s3060_s7 + $0xf8] sm:$0xff] %v2436_v32  ;;  %s3590_s15 = int_to_ptr.vmem [resolvable:$true] %s1784_s15 }
 0x21e   : > { %s1755_s13 = scalar_lea.sflag [#allocation9], %s2805_s17  ;;  %s2525_s14 = scalar_lea.vmem %s3590_s15, 4096 }
 0x21f   : > { %p2526_p7 = scmp.ne.s32.totalorder %s3590_s15, %s2525_s14  ;;  %s2609_s8 = smov [#allocation8]  }
 0x220   : > { %s2529_s25 = sshll.u32 %s2609_s8, 4  ;;  %s2530_s25 = int_to_ptr.vmem [resolvable:$false] %s2529_s25 }
 0x221   : > { %p2527_p9 = pnand %p2526_p7, %p3660_p12  ;;  %s2531_s18 = scalar_lea.vmem %s2530_s25, 8192 }
 0x222   : > { %p2532_p3 = scmp.lt.s32.totalorder %s3590_s15, %s2530_s25  ;;  %p2533_p8 = scmp.lt.s32.totalorder %s2531_s18, %s2525_s14 }
 0x223   : > { %p2528_p11 = pneg %p2527_p9 }
 0x224   : > { %p2534_p0 = por %p2533_p8, %p2532_p3 }
 0x226   : > { %p2535_p2 = pnand %p2534_p0, %p2528_p11 }
 0x228   : > { %2538 = shalt.err (!%p2535_p2)
}
 0x229   : > { %s2539_s7 = scalar_lea.hbm %s3588_s26, 4096  ;;  %s2543_s20 = scalar_lea.hbm %s3644_s6, 8192 }
 0x22a   : > { %p2540_p4 = scmp.ne.s32.totalorder %s3588_s26, %s2539_s7  ;;  %p2544_p1 = scmp.lt.u32.totalorder %s3588_s26, %s3644_s6 }
 0x22b   : > { %p2545_p10 = scmp.lt.u32.totalorder %s2543_s20, %s2539_s7  ;;  %p2547_p7 = scmp.lt.u32.totalorder %s2539_s7, %s3588_s26 }
 0x22c   : > { %p2541_p6 = pnand %p2540_p4, %p3660_p12 }
 0x22d   : > { %p2546_p5 = por %p2545_p10, %p2544_p1 }
 0x22e   : > { %p2542_p13 = pneg %p2541_p6 }
 0x22f   : > { %p2548_p9 = por %p2547_p7, %p2546_p5 }
 0x231   : > { %p2549_p11 = pnand %p2548_p9, %p2542_p13 }
 0x233   : > { %2552 = shalt.err (!%p2549_p11)
}
 0x234   : > { %2021 = dma.vmem_to_hbm [thread:$0]  (%p3660_p12), %s3590_s15, 4096, %s3588_s26, %s1755_s13, %s2607_s19, %s2607_s19, %s2608_s1  }
 0x235 PF: > { %s1799_s16 = sand.u32 1, %s2587_s21   ;;  %p3661_p3 = scmp.ne.s32.totalorder %s3652_s10, 0 }
 0x236   : > { %p3662_p8 = scmp.ge.s32.totalorder %s2599_s24, 2  ;;  %s1800_s14 = scalar_lea.sflag [#allocation4], %s1799_s16 }
 0x238   : > { %p2032_p0 = pnand %p3662_p8, %p3661_p3 }
 0x23a   : > { %2578 = dma.done.wait (!%p2032_p0), %s1800_s14, 4096  }
 0x23b   : > { %2580 = vsyncadd (!%p2032_p0), %s1800_s14, 4294963200  ;;  %s1809_s9 = scalar_lea.sflag [#allocation9], %s1799_s16 }
 0x23c   : > { %2582 = dma.done.wait (!%p2032_p0), %s1809_s9, 4096  }
 0x23d   : > { %2584 = vsyncadd (!%p2032_p0), %s1809_s9, 4294963200  ;;  %p26_p12 = scmp.ge.s32.totalorder %s2670_s27, 4   ;;  %s3663_s21 = smov %s2591_s22 }
 0x23e   : > { %s3664_s22 = smov %s2595_s23  ;;  %s3665_s23 = smov %s2682_s30 }
 0x23f   : > { %s3666_s24 = smov %s2670_s27  ;;  %28 = sbr.rel (!%p26_p12) target bundleno = 11 (0xb), region = 118 }
 0x246   :  { %1814 = vsyncpa [#allocation3], 1 }
 0x247   :  { %1816 = vsyncpa [#allocation3 + $0x1], 1 }
 0x248   :  { %1817 = vsyncpa [#allocation6], 1 }
 0x249   :  { %1819 = vsyncpa [#allocation6 + $0x1], 1 }
 0x24a   :  { %1820 = vsyncpa [#allocation4], 1 }
 0x24b   :  { %1822 = vsyncpa [#allocation4 + $0x1], 1 }
 0x24c   :  { %1823 = vsyncpa [#allocation9], 1 }
 0x24d   :  { %1825 = vsyncpa [#allocation9 + $0x1], 1 }

</bundles_post_ra>
